<compile_context>
chip_gen: v5e
topology: v5e:2x2
jax: 0.10.0
libtpu: 0.0.40
codegen_flags: <defaults>
</compile_context>

<pallas_src>
import functools

import numpy as np

import jax
import jax.numpy as jnp
from jax import lax
from jax.experimental import pallas as pl
from jax.experimental.pallas import tpu as pltpu

LANE = 128
HIGHEST = jax.lax.Precision.HIGHEST      # used by the pure-JAX reference only


# ------------------------------ Pallas kernel --------------------------------

def _net_kernel(lhs_ref, w_ref, out_ref, *, bp, hp1, k,
                off_m1, n_m1, off_m2, n_m2, off_fc1, off_tail, has_branch):
    """Whole network in one invocation; everything stays in VMEM / vregs.

    lhs_ref: (2*Hp1*bp, k*RB1) bf16 partial im2col, rows (a_h, ph, b_pad8),
             lanes (kh, w, cin).
    w_ref:   packed bf16 slab, width 256, 16-row-aligned blocks:
               [0:16]           biases (row0: b1|b2, row1: b_fc1|b_fc2(-1e30 pad))
               [off_m1:+n_m1]   conv1 Toeplitz, cols (a_w | pw, c1) per 128-group
               [off_m2:+n_m2]   conv2 Toeplitz, rows (kh | pw, c1) per 128-block
               [off_fc1:+128]   fc1 weight        (cols 0:128)
               [off_tail:+128]  fused branch (cols 0:128) | fc2 (cols 128:256)
    out_ref: (bp, 128) f32 log-probabilities (real rows < B, lanes < classes).
    """
    f32, bf16 = jnp.float32, jnp.bfloat16

    bias = w_ref[0:16, :].astype(f32)                       # (16, 256)
    b1, b2 = bias[0:1, 0:LANE], bias[0:1, LANE:2 * LANE]
    bfc1, bfc2 = bias[1:2, 0:LANE], bias[1:2, LANE:2 * LANE]

    # ---- stage 1: conv1 (kh folded into contraction) + 2x2 max-pool + ReLU ---
    y = jnp.dot(lhs_ref[...], w_ref[off_m1:off_m1 + n_m1, :],
                preferred_element_type=f32)                 # (2*hp1*bp, 256)
    half = hp1 * bp
    y = jnp.maximum(y[:half, :], y[half:, :])               # pool over oh phase
    y = jnp.maximum(y[:, 0:LANE], y[:, LANE:2 * LANE])      # pool over ow phase
    h1 = jnp.maximum(y + b1, 0.0)                           # (hp1*bp, 128) f32

    # ---- stage 2: conv2 + 2x2 max-pool + ReLU --------------------------------
    # TODO(synk): Dropout2d is identity here (eval mode); train-mode channel
    # dropout (p=0.5 with 1/(1-p) scaling) is not implemented.
    lhs2 = jnp.concatenate(
        [jnp.concatenate([h1[(oh + kh) * bp:(oh + kh + 1) * bp, :]
                          for kh in range(k)], axis=1)
         for oh in range(2)], axis=0).astype(bf16)          # (2*bp, k*128)
    y2 = jnp.dot(lhs2, w_ref[off_m2:off_m2 + n_m2, :],
                 preferred_element_type=f32)                # (2*bp, 256)
    y2 = jnp.maximum(y2[:bp, :], y2[bp:, :])                # pool over oh2
    y2 = jnp.maximum(y2[:, 0:LANE], y2[:, LANE:2 * LANE])   # pool over ow2
    feat = jnp.maximum(y2 + b2, 0.0).astype(bf16)           # (bp, 128)

    # ---- fc head: fc1+ReLU -> fused branches -> fc2 -> log_softmax -----------
    z = jnp.dot(feat, w_ref[off_fc1:off_fc1 + LANE, 0:LANE],
                preferred_element_type=f32)
    z = jnp.maximum(z + bfc1, 0.0).astype(bf16)
    if has_branch:                                          # fb1(h) + fb2(h) fused
        z = jnp.dot(z, w_ref[off_tail:off_tail + LANE, 0:LANE],
                    preferred_element_type=f32).astype(bf16)
    logits = jnp.dot(z, w_ref[off_tail:off_tail + LANE, LANE:2 * LANE],
                     preferred_element_type=f32) + bfc2     # pads sit at ~-1e30
    m = jnp.max(logits, axis=-1, keepdims=True)
    s = logits - m
    lse = jnp.log(jnp.sum(jnp.exp(s), axis=-1, keepdims=True))
    out_ref[...] = s - lse


# --------------------------- trace-time weight prep --------------------------

def _toeplitz_rhs(w_oihw, w_in, wp_out, row_block, col_block, pool=2):
    """Banded conv matrix with kh folded into the rows.

    Returns (K*row_block, pool*col_block); row = kh*row_block + (w*cin + ci),
    col = a_w*col_block + (pw*cout + co); entry = W[co, ci, kh, w - (pool*pw+a_w)]
    when that tap is in range, else 0.  Padding rows/cols are zero.
    """
    cout, cin, k, _ = w_oihw.shape
    wt = jnp.transpose(w_oihw, (2, 3, 1, 0)).astype(jnp.float32)    # (kh,kw,ci,co)
    ow = pool * np.arange(wp_out)[None, :] + np.arange(pool)[:, None]   # (pool, wp)
    kw = np.arange(w_in)[:, None, None] - ow[None, :, :]                # (w,pool,wp)
    mask = ((kw >= 0) & (kw < k)).astype(np.float32)
    kw_c = np.clip(kw, 0, k - 1)
    m = wt[:, kw_c, :, :] * jnp.asarray(mask)[None, :, :, :, None, None]
    m = jnp.transpose(m, (0, 1, 4, 2, 3, 5))            # (kh, w, ci, pool, wp, co)
    m = m.reshape(k, w_in * cin, pool, wp_out * cout)
    m = jnp.pad(m, ((0, 0), (0, row_block - w_in * cin),
                    (0, 0), (0, col_block - wp_out * cout)))
    return m.reshape(k * row_block, pool * col_block)


def net_forward(x, params, *, ksize=5, pool=2):
    if x.ndim == 3:                                  # torch.unsqueeze(x, 1)
        x = x[:, None, :, :]
    B, Cin, H, W = x.shape
    C1, C2 = params["conv1_w"].shape[0], params["conv2_w"].shape[0]
    K = ksize
    Hp1, Wp1 = (H - K + 1) // pool, (W - K + 1) // pool
    Hp2, Wp2 = (Hp1 - K + 1) // pool, (Wp1 - K + 1) // pool
    hidden, classes = params["fc1_w"].shape[0], params["fc2_w"].shape[0]
    # The fused kernel assumes the second pooled map is one row high (true for
    # the 16x16 inputs this module implies) and that each stage fits one lane
    # group.  TODO(synk): other geometries fall outside this fast path.
    assert Hp2 == 1 and Wp2 >= 1
    assert params["fc1_w"].shape[1] == C2 * Hp2 * Wp2
    assert Wp1 * C1 <= LANE and Wp2 * C2 <= LANE
    assert hidden <= LANE and classes <= LANE

    BP = max(8, -(-B // 8) * 8)            # batch rows padded to a sublane tile
    RB1 = -(-(W * Cin) // 16) * 16         # per-kh lane block of the im2col LHS

    # Partial im2col (over kh only): rows (a_h, ph, b_pad), lanes (kh, w, cin).
    xr = jnp.transpose(x, (2, 0, 3, 1)).astype(jnp.float32)         # (H, B, W, Cin)
    ih = (pool * np.arange(Hp1)[None, :, None]
          + np.arange(pool)[:, None, None]
          + np.arange(K)[None, None, :])                            # (pool, Hp1, K)
    g = jnp.transpose(xr[ih], (0, 1, 3, 2, 4, 5))                   # (2,Hp1,B,K,W,Cin)
    g = jnp.pad(g, ((0, 0), (0, 0), (0, BP - B), (0, 0), (0, 0), (0, 0)))
    g = jnp.pad(g.reshape(pool, Hp1, BP, K, W * Cin),
                ((0, 0),) * 4 + ((0, RB1 - W * Cin),))
    lhs1 = g.reshape(pool * Hp1 * BP, K * RB1).astype(jnp.bfloat16)

    # Banded Toeplitz conv matrices (kh in rows, pool phase in 128-lane groups).
    rhs1 = _toeplitz_rhs(params["conv1_w"], W, Wp1, RB1, LANE, pool)
    rhs2 = _toeplitz_rhs(params["conv2_w"], Wp1, Wp2, LANE, LANE, pool)

    # Bias block (-1e30 pads beyond `classes` keep the padded-lane softmax exact).
    def padlane(v):
        return jnp.pad(v.reshape(-1), (0, LANE - v.size))
    bias_blk = jnp.zeros((16, 2 * LANE), jnp.float32)
    bias_blk = bias_blk.at[0].set(jnp.concatenate(
        [padlane(jnp.tile(params["conv1_b"], Wp1)),
         padlane(jnp.tile(params["conv2_b"], Wp2))]))
    bias_blk = bias_blk.at[1].set(jnp.concatenate(
        [padlane(params["fc1_b"]),
         jnp.concatenate([params["fc2_b"],
                          jnp.full((LANE - classes,), -1e30, jnp.float32)])]))

    # fc1 with input rows permuted from torch's (c2, h2, w2) flatten order to
    # the kernel's (w2, c2) lane order (identity for the 1x1 pooled map).
    feat_real = Wp2 * C2
    li = np.arange(feat_real)
    perm = (li % C2) * (Hp2 * Wp2) + (li // C2)
    w_fc1 = jnp.transpose(params["fc1_w"])
    if not np.array_equal(perm, li):
        w_fc1 = w_fc1[jnp.asarray(perm)]

    has_branch = ("fb1_w" in params) and ("fb2_w" in params)
    w_br = (jnp.transpose(params["fb1_w"] + params["fb2_w"]) if has_branch
            else jnp.eye(hidden, dtype=jnp.float32))
    w_fc2 = jnp.transpose(params["fc2_w"])

    def pad2(a, r, c):
        return jnp.pad(a, ((0, r - a.shape[0]), (0, c - a.shape[1])))

    off_m1 = 16
    off_m2 = off_m1 + rhs1.shape[0]
    off_fc1 = off_m2 + rhs2.shape[0]
    off_tail = off_fc1 + LANE
    wslab = jnp.concatenate(
        [bias_blk, rhs1, rhs2,
         pad2(w_fc1, LANE, 2 * LANE),
         jnp.concatenate([pad2(w_br, LANE, LANE), pad2(w_fc2, LANE, LANE)],
                         axis=1)],
        axis=0).astype(jnp.bfloat16)                    # (off_tail + 128, 256)

    kernel = functools.partial(
        _net_kernel, bp=BP, hp1=Hp1, k=K,
        off_m1=off_m1, n_m1=rhs1.shape[0], off_m2=off_m2, n_m2=rhs2.shape[0],
        off_fc1=off_fc1, off_tail=off_tail, has_branch=has_branch)

    flops = 2 * (lhs1.shape[0] * lhs1.shape[1] * 2 * LANE
                 + 2 * BP * K * LANE * 2 * LANE
                 + 3 * BP * LANE * LANE)
    cost = pl.CostEstimate(flops=flops, transcendentals=BP * LANE + BP,
                           bytes_accessed=(lhs1.size * 2 + wslab.size * 2
                                           + BP * LANE * 4))

    # Single invocation (no grid): 2 input DMAs + 1 output.  TODO(synk): for a
    # real batch (B >= 16) add a batch grid axis with
    # dimension_semantics=("parallel",) so both v7x TensorCores are used.
    out = pl.pallas_call(
        kernel,
        out_shape=jax.ShapeDtypeStruct((BP, LANE), jnp.float32),
        in_specs=[pl.BlockSpec(memory_space=pltpu.MemorySpace.VMEM)] * 2,
        out_specs=pl.BlockSpec(memory_space=pltpu.MemorySpace.VMEM),
        cost_estimate=cost,
    )(lhs1, wslab)
    return out[:B, :classes]


# --------------------------- pure-JAX reference ------------------------------

def reference_forward(x_nchw, params):
    mm = functools.partial(jnp.matmul, precision=HIGHEST)

    def conv(x, w, b):
        y = lax.conv_general_dilated(x, w, (1, 1), "VALID",
                                     dimension_numbers=("NCHW", "OIHW", "NCHW"),
                                     precision=HIGHEST)
        return y + b.reshape(1, -1, 1, 1)

    def maxpool2(x):
        return lax.reduce_window(x, -jnp.inf, lax.max,
                                 (1, 1, 2, 2), (1, 1, 2, 2), "VALID")

    x = x_nchw
    x = jnp.maximum(maxpool2(conv(x, params["conv1_w"], params["conv1_b"])), 0.0)
    x = jnp.maximum(maxpool2(conv(x, params["conv2_w"], params["conv2_b"])), 0.0)
    x = x.reshape(x.shape[0], -1)
    h = jnp.maximum(mm(x, params["fc1_w"].T) + params["fc1_b"], 0.0)
    if "fb1_w" in params:
        h = mm(h, params["fb1_w"].T) + mm(h, params["fb2_w"].T)
    logits = mm(h, params["fc2_w"].T) + params["fc2_b"]
    return jax.nn.log_softmax(logits, axis=1)


# --------------------------------- main ---------------------------------------

if __name__ == "__main__":
    B, CIN, H, W = 2, 4, 16, 16
    HIDDEN, CLASSES, K = 32, 10, 5
    # fc1 in_features (_fixme): 20 channels * spatial after two (conv5 + pool2)
    FIXME = 20 * ((((H - K + 1) // 2) - K + 1) // 2) ** 2   # = 20 for 16x16 input

    key = jax.random.PRNGKey(0)
    ks = jax.random.split(key, 11)

    def init(k, shape, scale=0.1):
        return scale * jax.random.normal(k, shape, jnp.float32)

    params = {
        "conv1_w": init(ks[0], (10, CIN, K, K)),
        "conv1_b": init(ks[1], (10,)),
        "conv2_w": init(ks[2], (20, 10, K, K)),
        "conv2_b": init(ks[3], (20,)),
        "fc1_w":   init(ks[4], (HIDDEN, FIXME)),
        "fc1_b":   init(ks[5], (HIDDEN,)),
        "fb1_w":   init(ks[6], (HIDDEN, HIDDEN)),
        "fb2_w":   init(ks[7], (HIDDEN, HIDDEN)),
        "fc2_w":   init(ks[8], (CLASSES, HIDDEN)),
        "fc2_b":   init(ks[9], (CLASSES,)),
    }
    x = jax.random.normal(ks[10], (B, CIN, H, W), jnp.float32)

    fwd = jax.jit(net_forward)
    out = jax.block_until_ready(fwd(x, params))
    ref = jax.block_until_ready(reference_forward(x, params))

    assert out.shape == (B, CLASSES), out.shape
    max_err = float(jnp.max(jnp.abs(out - ref)))
    # bf16 matmul operands (f32 accumulation) vs an f32 HIGHEST-precision
    # reference: allow bf16-rounding slack on the log-probabilities.
    assert max_err < 5e-2, f"mismatch vs reference: max|diff|={max_err}"
    print("KERNEL_OK")
</pallas_src>

<mosaic_0001>
module attributes {stable_mosaic.version = 11 : i64} {
  func.func @_net_kernel(%arg0: memref<96x320xbf16, #tpu.memory_space<vmem>>, %arg1: memref<1232x256xbf16, #tpu.memory_space<vmem>>, %arg2: memref<8x128xf32, #tpu.memory_space<vmem>>) attributes {dimension_semantics = [], scalar_prefetch = 0 : i64, scratch_operands = 0 : i64, tpu.core_type = #tpu.core_type<tc>} {
    %c0 = arith.constant 0 : index
    %c0_0 = arith.constant 0 : index
    %0 = vector.load %arg1[%c0, %c0_0] : memref<1232x256xbf16, #tpu.memory_space<vmem>>, vector<16x256xbf16>
    %1 = arith.extf %0 : vector<16x256xbf16> to vector<16x256xf32>
    %2 = vector.extract_strided_slice %1 {offsets = [0, 0], sizes = [1, 128], strides = [1, 1]} : vector<16x256xf32> to vector<1x128xf32>
    %3 = vector.extract_strided_slice %1 {offsets = [0, 128], sizes = [1, 128], strides = [1, 1]} : vector<16x256xf32> to vector<1x128xf32>
    %4 = vector.extract_strided_slice %1 {offsets = [1, 0], sizes = [1, 128], strides = [1, 1]} : vector<16x256xf32> to vector<1x128xf32>
    %5 = vector.extract_strided_slice %1 {offsets = [1, 128], sizes = [1, 128], strides = [1, 1]} : vector<16x256xf32> to vector<1x128xf32>
    %c0_1 = arith.constant 0 : index
    %c0_2 = arith.constant 0 : index
    %6 = vector.load %arg0[%c0_1, %c0_2] : memref<96x320xbf16, #tpu.memory_space<vmem>>, vector<96x320xbf16>
    %c16 = arith.constant 16 : index
    %c0_3 = arith.constant 0 : index
    %7 = vector.load %arg1[%c16, %c0_3] : memref<1232x256xbf16, #tpu.memory_space<vmem>>, vector<320x256xbf16>
    %cst = arith.constant dense<0.000000e+00> : vector<96x256xf32>
    %8 = tpu.matmul %6, %7, %cst {dimension_numbers = #tpu.dot_dimension_numbers<[1], [0], [0], [1], [0, 0, 1, 1], [], []>} : vector<96x320xbf16>, vector<320x256xbf16>, vector<96x256xf32> -> vector<96x256xf32>
    %9 = vector.extract_strided_slice %8 {offsets = [0, 0], sizes = [48, 256], strides = [1, 1]} : vector<96x256xf32> to vector<48x256xf32>
    %10 = vector.extract_strided_slice %8 {offsets = [48, 0], sizes = [48, 256], strides = [1, 1]} : vector<96x256xf32> to vector<48x256xf32>
    %11 = arith.maximumf %9, %10 : vector<48x256xf32>
    %12 = vector.extract_strided_slice %11 {offsets = [0, 0], sizes = [48, 128], strides = [1, 1]} : vector<48x256xf32> to vector<48x128xf32>
    %13 = vector.extract_strided_slice %11 {offsets = [0, 128], sizes = [48, 128], strides = [1, 1]} : vector<48x256xf32> to vector<48x128xf32>
    %14 = arith.maximumf %12, %13 : vector<48x128xf32>
    %15 = vector.broadcast %2 : vector<1x128xf32> to vector<48x128xf32>
    %16 = arith.addf %14, %15 : vector<48x128xf32>
    %cst_4 = arith.constant 0.000000e+00 : f32
    %17 = vector.broadcast %cst_4 : f32 to vector<48x128xf32>
    %18 = arith.maximumf %16, %17 : vector<48x128xf32>
    %19 = vector.extract_strided_slice %18 {offsets = [0, 0], sizes = [8, 128], strides = [1, 1]} : vector<48x128xf32> to vector<8x128xf32>
    %20 = vector.extract_strided_slice %18 {offsets = [8, 0], sizes = [8, 128], strides = [1, 1]} : vector<48x128xf32> to vector<8x128xf32>
    %21 = vector.extract_strided_slice %18 {offsets = [16, 0], sizes = [8, 128], strides = [1, 1]} : vector<48x128xf32> to vector<8x128xf32>
    %22 = vector.extract_strided_slice %18 {offsets = [24, 0], sizes = [8, 128], strides = [1, 1]} : vector<48x128xf32> to vector<8x128xf32>
    %23 = vector.extract_strided_slice %18 {offsets = [32, 0], sizes = [8, 128], strides = [1, 1]} : vector<48x128xf32> to vector<8x128xf32>
    %24 = tpu.concatenate %19, %20, %21, %22, %23 in 1 : vector<8x128xf32>, vector<8x128xf32>, vector<8x128xf32>, vector<8x128xf32>, vector<8x128xf32> -> vector<8x640xf32>
    %25 = vector.extract_strided_slice %18 {offsets = [8, 0], sizes = [8, 128], strides = [1, 1]} : vector<48x128xf32> to vector<8x128xf32>
    %26 = vector.extract_strided_slice %18 {offsets = [16, 0], sizes = [8, 128], strides = [1, 1]} : vector<48x128xf32> to vector<8x128xf32>
    %27 = vector.extract_strided_slice %18 {offsets = [24, 0], sizes = [8, 128], strides = [1, 1]} : vector<48x128xf32> to vector<8x128xf32>
    %28 = vector.extract_strided_slice %18 {offsets = [32, 0], sizes = [8, 128], strides = [1, 1]} : vector<48x128xf32> to vector<8x128xf32>
    %29 = vector.extract_strided_slice %18 {offsets = [40, 0], sizes = [8, 128], strides = [1, 1]} : vector<48x128xf32> to vector<8x128xf32>
    %30 = tpu.concatenate %25, %26, %27, %28, %29 in 1 : vector<8x128xf32>, vector<8x128xf32>, vector<8x128xf32>, vector<8x128xf32>, vector<8x128xf32> -> vector<8x640xf32>
    %31 = tpu.concatenate %24, %30 in 0 : vector<8x640xf32>, vector<8x640xf32> -> vector<16x640xf32>
    %32 = arith.truncf %31 : vector<16x640xf32> to vector<16x640xbf16>
    %c336 = arith.constant 336 : index
    %c0_5 = arith.constant 0 : index
    %33 = vector.load %arg1[%c336, %c0_5] : memref<1232x256xbf16, #tpu.memory_space<vmem>>, vector<640x256xbf16>
    %cst_6 = arith.constant dense<0.000000e+00> : vector<16x256xf32>
    %34 = tpu.matmul %32, %33, %cst_6 {dimension_numbers = #tpu.dot_dimension_numbers<[1], [0], [0], [1], [0, 0, 1, 1], [], []>} : vector<16x640xbf16>, vector<640x256xbf16>, vector<16x256xf32> -> vector<16x256xf32>
    %35 = vector.extract_strided_slice %34 {offsets = [0, 0], sizes = [8, 256], strides = [1, 1]} : vector<16x256xf32> to vector<8x256xf32>
    %36 = vector.extract_strided_slice %34 {offsets = [8, 0], sizes = [8, 256], strides = [1, 1]} : vector<16x256xf32> to vector<8x256xf32>
    %37 = arith.maximumf %35, %36 : vector<8x256xf32>
    %38 = vector.extract_strided_slice %37 {offsets = [0, 0], sizes = [8, 128], strides = [1, 1]} : vector<8x256xf32> to vector<8x128xf32>
    %39 = vector.extract_strided_slice %37 {offsets = [0, 128], sizes = [8, 128], strides = [1, 1]} : vector<8x256xf32> to vector<8x128xf32>
    %40 = arith.maximumf %38, %39 : vector<8x128xf32>
    %41 = vector.broadcast %3 : vector<1x128xf32> to vector<8x128xf32>
    %42 = arith.addf %40, %41 : vector<8x128xf32>
    %cst_7 = arith.constant 0.000000e+00 : f32
    %43 = vector.broadcast %cst_7 : f32 to vector<8x128xf32>
    %44 = arith.maximumf %42, %43 : vector<8x128xf32>
    %45 = arith.truncf %44 : vector<8x128xf32> to vector<8x128xbf16>
    %c976 = arith.constant 976 : index
    %c0_8 = arith.constant 0 : index
    %46 = vector.load %arg1[%c976, %c0_8] : memref<1232x256xbf16, #tpu.memory_space<vmem>>, vector<128x128xbf16>
    %cst_9 = arith.constant dense<0.000000e+00> : vector<8x128xf32>
    %47 = tpu.matmul %45, %46, %cst_9 {dimension_numbers = #tpu.dot_dimension_numbers<[1], [0], [0], [1], [0, 0, 1, 1], [], []>} : vector<8x128xbf16>, vector<128x128xbf16>, vector<8x128xf32> -> vector<8x128xf32>
    %48 = vector.broadcast %4 : vector<1x128xf32> to vector<8x128xf32>
    %49 = arith.addf %47, %48 : vector<8x128xf32>
    %cst_10 = arith.constant 0.000000e+00 : f32
    %50 = vector.broadcast %cst_10 : f32 to vector<8x128xf32>
    %51 = arith.maximumf %49, %50 : vector<8x128xf32>
    %52 = arith.truncf %51 : vector<8x128xf32> to vector<8x128xbf16>
    %c1104 = arith.constant 1104 : index
    %c0_11 = arith.constant 0 : index
    %53 = vector.load %arg1[%c1104, %c0_11] : memref<1232x256xbf16, #tpu.memory_space<vmem>>, vector<128x128xbf16>
    %cst_12 = arith.constant dense<0.000000e+00> : vector<8x128xf32>
    %54 = tpu.matmul %52, %53, %cst_12 {dimension_numbers = #tpu.dot_dimension_numbers<[1], [0], [0], [1], [0, 0, 1, 1], [], []>} : vector<8x128xbf16>, vector<128x128xbf16>, vector<8x128xf32> -> vector<8x128xf32>
    %55 = arith.truncf %54 : vector<8x128xf32> to vector<8x128xbf16>
    %c1104_13 = arith.constant 1104 : index
    %c128 = arith.constant 128 : index
    %56 = vector.load %arg1[%c1104_13, %c128] : memref<1232x256xbf16, #tpu.memory_space<vmem>>, vector<128x128xbf16>
    %cst_14 = arith.constant dense<0.000000e+00> : vector<8x128xf32>
    %57 = tpu.matmul %55, %56, %cst_14 {dimension_numbers = #tpu.dot_dimension_numbers<[1], [0], [0], [1], [0, 0, 1, 1], [], []>} : vector<8x128xbf16>, vector<128x128xbf16>, vector<8x128xf32> -> vector<8x128xf32>
    %58 = vector.broadcast %5 : vector<1x128xf32> to vector<8x128xf32>
    %59 = arith.addf %57, %58 : vector<8x128xf32>
    %cst_15 = arith.constant dense<0xFF800000> : vector<8xf32>
    %60 = vector.multi_reduction <maximumf>, %59, %cst_15 [1] : vector<8x128xf32> to vector<8xf32>
    %61 = vector.shape_cast %60 : vector<8xf32> to vector<8x1xf32>
    %62 = vector.broadcast %61 : vector<8x1xf32> to vector<8x128xf32>
    %63 = arith.subf %59, %62 : vector<8x128xf32>
    %64 = math.exp %63 : vector<8x128xf32>
    %cst_16 = arith.constant dense<0.000000e+00> : vector<8xf32>
    %65 = vector.multi_reduction <add>, %64, %cst_16 [1] : vector<8x128xf32> to vector<8xf32>
    %66 = vector.shape_cast %65 : vector<8xf32> to vector<8x1xf32>
    %67 = math.log %66 : vector<8x1xf32>
    %68 = vector.broadcast %67 : vector<8x1xf32> to vector<8x128xf32>
    %69 = arith.subf %63, %68 : vector<8x128xf32>
    %c0_17 = arith.constant 0 : index
    %c0_18 = arith.constant 0 : index
    %70 = vector.load %arg2[%c0_17, %c0_18] : memref<8x128xf32, #tpu.memory_space<vmem>>, vector<8x128xf32>
    tpu.vector_store %arg2[%c0_17, %c0_18], %69 {strides = array<i32>} : memref<8x128xf32, #tpu.memory_space<vmem>>, vector<8x128xf32>,
    return
  }
}

</mosaic_0001>

<bundles_post_ra>
// kernel: tile.8
= control target key start
LH: loop header
LB: loop body
LE: loop exit
PB: predicated region body
PF: predicated region fallthrough
CT: control target
= control target key end

     0   :  { %s22_s0 = inlined_call_operand.vmem [shape: f32[10], index: 0, kind: input, shape index: {}]   ;;  %s23_s1 = inlined_call_operand.vmem [shape: f32[6,10], index: 1, kind: output, shape index: {}]  }
   0x1   :  { %v4_v0 = vld [vmem:[%s22_s0] ss:$0 sm:$0xff] }
   0x2   :  { %5 = vst [vmem:[%s23_s1] sm:$0xff] %v4_v0 }

// kernel: tile.9
= control target key start
LH: loop header
LB: loop body
LE: loop exit
PB: predicated region body
PF: predicated region fallthrough
CT: control target
= control target key end

     0   :  { %s51_s10 = smov 50   ;;  %s52_s11 = smov 30   ;;  %vm3_vm0 = vcmask 80896   ;;  %vm9_vm1 = vcmask 490896   ;;  %vm15_vm2 = vcmask 408896   ;;  %vm21_vm3 = vcmask 326896   ;;  %s87_s0 = inlined_call_operand.vmem [shape: f32[6,10], index: 0, kind: input, shape index: {}]   ;;  %s88_s1 = inlined_call_operand.vmem [shape: f32[60], index: 1, kind: output, shape index: {}]  }
   0x1   :  { %v41_v0 = vld [vmem:[%s87_s0 + $0x5] sm:$0x1]   ;;  %v43_v1 = vld [vmem:[%s87_s0 + $0x3] sm:$0x1]   ;;  %v45_v2 = vld [vmem:[%s87_s0 + $0x1] sm:$0x1]  }
   0x2   :  { %7 = vrot.lane.b32.xlu0 %v41_v0, %s51_s10  ;;  %19 = vrot.lane.b32.xlu1 %v43_v1, %s52_s11  ;;  %s53_s14 = smov 10   ;;  %v42_v3 = vld [vmem:[%s87_s0 + $0x4] sm:$0x1]   ;;  %v44_v4 = vld [vmem:[%s87_s0 + $0x2] sm:$0x1]   ;;  %s54_s19 = smov 40  }
   0x3   :  { %31 = vrot.lane.b32.xlu2 %v45_v2, %s53_s14  ;;  %s55_s20 = smov 20   ;;  %v2_v5 = vld [vmem:[%s87_s0] sm:$0x1]   ;;  %vm27_vm4 = vcmask 244896   ;;  %vm33_vm5 = vcmask 162896  }
   0x4   :  { %4 = vst.msk [vmem:[#allocation0] sm:$0x1] %vm3_vm0, %v2_v5  }
   0xa   :  { %13 = vrot.lane.b32.xlu0 %v42_v3, %s54_s19  ;;  %25 = vrot.lane.b32.xlu1 %v44_v4, %s55_s20 }
  0x5d   :  { %v32_v6 = vpop.permute.xlu2 %31  }
  0x74   :  { %v8_v7 = vpop.permute.xlu0 %7   ;;  %v20_v8 = vpop.permute.xlu1 %19  }
  0x75   :  { %10 = vst.msk [vmem:[#allocation0] sm:$0x1] %vm9_vm1, %v8_v7  }
  0x7c   :  { %v14_v9 = vpop.permute.xlu0 %13   ;;  %v26_v10 = vpop.permute.xlu1 %25  }
  0x7d   :  { %16 = vst.msk [vmem:[#allocation0] sm:$0x1] %vm15_vm2, %v14_v9  }
  0x7e   :  { %22 = vst.msk [vmem:[#allocation0] sm:$0x1] %vm21_vm3, %v20_v8  }
  0x7f   :  { %28 = vst.msk [vmem:[#allocation0] sm:$0x1] %vm27_vm4, %v26_v10  }
  0x80   :  { %34 = vst.msk [vmem:[#allocation0] sm:$0x1] %vm33_vm5, %v32_v6  }
  0x87   :  { %v37_v11 = vld [vmem:[#allocation0] sm:$0x1] }
  0x88   :  { %40 = vst [vmem:[%s88_s1] sm:$0x1] %v37_v11 }

// kernel: net_forward.1
= control target key start
LH: loop header
LB: loop body
LE: loop exit
PB: predicated region body
PF: predicated region fallthrough
CT: control target
= control target key end

     0   :  { %vm369_vm0 = vcmask 523264   ;;  %s3563_s1 = inlined_call_operand.vmem [shape: bf16[1232,256], index: 1, kind: input, shape index: {}]   ;;  %s3564_s0 = inlined_call_operand.vmem [shape: bf16[96,320], index: 0, kind: input, shape index: {}]   ;;  %s3565_s2 = inlined_call_operand.vmem [shape: f32[8,128], index: 2, kind: output, shape index: {}]  }
   0x1   :  { %v1666_v0 = vld [vmem:[%s3563_s1 + $0x80] sm:$0xf]  ;;  %v2229_v1 = vld [vmem:[%s3563_s1 + $0x84] sm:$0xf0]  ;;  %v1658_v9 = vld [vmem:[%s3563_s1 + $0x70] sm:$0xf] }
   0x2   :  { %v1730_v2 = vld [vmem:[%s3563_s1 + $0x100] sm:$0xf]  ;;  %v1667_v3 = vor.u32 %v2229_v1, %v1666_v0  ;;  %v2245_v4 = vld [vmem:[%s3563_s1 + $0x104] sm:$0xf0]  ;;  %v2227_v10 = vld [vmem:[%s3563_s1 + $0x74] sm:$0xf0] }
   0x3   :  { %v1762_v5 = vld [vmem:[%s3563_s1 + $0x140] sm:$0xf]  ;;  %v2253_v6 = vld [vmem:[%s3563_s1 + $0x144] sm:$0xf0]  ;;  %v1731_v7 = vor.u32 %v2245_v4, %v1730_v2  ;;  %v1722_v11 = vld [vmem:[%s3563_s1 + $0xf0] sm:$0xf]  ;;  %v1659_v12 = vor.u32 %v2227_v10, %v1658_v9 }
   0x4   :  { %v1763_v8 = vor.u32 %v2253_v6, %v1762_v5  ;;  %388 = vmatpush.bf16.msra.mxu0 %v1667_v3  ;;  %v2243_v13 = vld [vmem:[%s3563_s1 + $0xf4] sm:$0xf0]  ;;  %v1754_v14 = vld [vmem:[%s3563_s1 + $0x130] sm:$0xf]  ;;  %v1650_v18 = vld [vmem:[%s3563_s1 + $0x60] sm:$0xf] }
   0x5   :  { %v2251_v15 = vld [vmem:[%s3563_s1 + $0x134] sm:$0xf0]  ;;  %427 = vmatpush.bf16.msra.mxu1 %v1731_v7  ;;  %v1723_v16 = vor.u32 %v2243_v13, %v1722_v11  ;;  %v2225_v19 = vld [vmem:[%s3563_s1 + $0x64] sm:$0xf0]  ;;  %v1714_v20 = vld [vmem:[%s3563_s1 + $0xe0] sm:$0xf] }
   0x6   :  { %470 = vmatpush.bf16.msra.mxu2 %v1763_v8  ;;  %v1755_v17 = vor.u32 %v2251_v15, %v1754_v14  ;;  %v2241_v21 = vld [vmem:[%s3563_s1 + $0xe4] sm:$0xf0]  ;;  %v1746_v22 = vld [vmem:[%s3563_s1 + $0x120] sm:$0xf]  ;;  %v1651_v24 = vor.u32 %v2225_v19, %v1650_v18  ;;  %v1642_v27 = vld [vmem:[%s3563_s1 + $0x50] sm:$0xf] }
   0x7   :  { %v2249_v23 = vld [vmem:[%s3563_s1 + $0x124] sm:$0xf0]  ;;  %v1715_v25 = vor.u32 %v2241_v21, %v1714_v20  ;;  %v2223_v28 = vld [vmem:[%s3563_s1 + $0x54] sm:$0xf0]  ;;  %v1706_v29 = vld [vmem:[%s3563_s1 + $0xd0] sm:$0xf] }
   0x8   :  { %389 = vmatpush.bf16.msra.mxu0 %v1659_v12  ;;  %v1747_v26 = vor.u32 %v2249_v23, %v1746_v22  ;;  %v2239_v30 = vld [vmem:[%s3563_s1 + $0xd4] sm:$0xf0]  ;;  %v1738_v31 = vld [vmem:[%s3563_s1 + $0x110] sm:$0xf]  ;;  %v1643_v33 = vor.u32 %v2223_v28, %v1642_v27  ;;  %v1546_v34 = vld [vmem:[%s3564_s0 + $0x8] sm:$0xf] }
   0x9   :  { %428 = vmatpush.bf16.msra.mxu1 %v1723_v16  ;;  %v2247_v32 = vld [vmem:[%s3563_s1 + $0x114] sm:$0xf0]  ;;  %v1707_v35 = vor.u32 %v2239_v30, %v1706_v29  ;;  %v2198_v37 = vld [vmem:[%s3564_s0 + $0x10] sm:$0xf0]  ;;  %v1634_v38 = vld [vmem:[%s3563_s1 + $0x40] sm:$0xf] }
   0xa   :  { %471 = vmatpush.bf16.msra.mxu2 %v1755_v17  ;;  %v1739_v36 = vor.u32 %v2247_v32, %v1738_v31  ;;  %v2221_v39 = vld [vmem:[%s3563_s1 + $0x44] sm:$0xf0]  ;;  %v1698_v40 = vld [vmem:[%s3563_s1 + $0xc0] sm:$0xf]  ;;  %v2467_v42 = vor.u32 %v2198_v37, %v1546_v34  ;;  %v1626_v44 = vld [vmem:[%s3563_s1 + $0x30] sm:$0xf] }
   0xb   :  { %v2237_v41 = vld [vmem:[%s3563_s1 + $0xc4] sm:$0xf0]  ;;  %v1635_v43 = vor.u32 %v2221_v39, %v1634_v38  ;;  %v2219_v46 = vld [vmem:[%s3563_s1 + $0x34] sm:$0xf0]  ;;  %v2244_v47 = vld [vmem:[%s3563_s1 + $0x104] sm:$0xf] }
   0xc   :  { %390 = vmatpush.bf16.msra.mxu0 %v1651_v24  ;;  %v1699_v45 = vor.u32 %v2237_v41, %v1698_v40  ;;  %v1732_v48 = vld [vmem:[%s3563_s1 + $0x108] sm:$0xf0]  ;;  %v1690_v49 = vld [vmem:[%s3563_s1 + $0xb0] sm:$0xf]  ;;  %v2235_v50 = vld [vmem:[%s3563_s1 + $0xb4] sm:$0xf0]  ;;  %v1627_v52 = vor.u32 %v2219_v46, %v1626_v44 }
   0xd   :  { %429 = vmatpush.bf16.msra.mxu1 %v1715_v25  ;;  %v1735_v51 = vor.u32 %v2244_v47, %v1732_v48  ;;  %v2242_v53 = vld [vmem:[%s3563_s1 + $0xf4] sm:$0xf]  ;;  %v1724_v54 = vld [vmem:[%s3563_s1 + $0xf8] sm:$0xf0]  ;;  %v1691_v55 = vor.u32 %v2235_v50, %v1690_v49  ;;  %v1618_v56 = vld [vmem:[%s3563_s1 + $0x20] sm:$0xf] }
   0xe   :  { %472 = vmatpush.bf16.msra.mxu2 %v1747_v26  ;;  %v2217_v57 = vld [vmem:[%s3563_s1 + $0x24] sm:$0xf0]  ;;  %v1682_v58 = vld [vmem:[%s3563_s1 + $0xa0] sm:$0xf]  ;;  %v1727_v59 = vor.u32 %v2242_v53, %v1724_v54  ;;  %v2240_v61 = vld [vmem:[%s3563_s1 + $0xe4] sm:$0xf] }
   0xf   :  { %v2233_v60 = vld [vmem:[%s3563_s1 + $0xa4] sm:$0xf0]  ;;  %v1716_v62 = vld [vmem:[%s3563_s1 + $0xe8] sm:$0xf0]  ;;  %v1619_v63 = vor.u32 %v2217_v57, %v1618_v56  ;;  %v1610_v1 = vld [vmem:[%s3563_s1 + $0x10] sm:$0xf] }
  0x10   :  { %391 = vmatpush.bf16.msra.mxu0 %v1643_v33  ;;  %v1683_v0 = vor.u32 %v2233_v60, %v1682_v58  ;;  %v2215_v2 = vld [vmem:[%s3563_s1 + $0x14] sm:$0xf0]  ;;  %v1674_v3 = vld [vmem:[%s3563_s1 + $0x90] sm:$0xf]  ;;  %v1719_v4 = vor.u32 %v2240_v61, %v1716_v62  ;;  %v2252_v6 = vld [vmem:[%s3563_s1 + $0x144] sm:$0xf] }
  0x11   :  { %430 = vmatpush.bf16.msra.mxu1 %v1707_v35  ;;  %v2231_v5 = vld [vmem:[%s3563_s1 + $0x94] sm:$0xf0]  ;;  %v1764_v7 = vld [vmem:[%s3563_s1 + $0x148] sm:$0xf0]  ;;  %v1611_v8 = vor.u32 %v2215_v2, %v1610_v1  ;;  %v1538_v9 = vld [vmem:[%s3564_s0] sm:$0xf] }
  0x12   :  { %473 = vmatpush.bf16.msra.mxu2 %v1739_v36  ;;  %v2197_v10 = vld [vmem:[%s3564_s0 + $0x8] sm:$0xf0]  ;;  %v2196_v11 = vld [vmem:[%s3564_s0 + $0x4] sm:$0xf]  ;;  %v1675_v12 = vor.u32 %v2231_v5, %v1674_v3  ;;  %v1540_v13 = vld [vmem:[%s3564_s0 + $0xc] sm:$0xf0]  ;;  %v1767_v16 = vor.u32 %v2252_v6, %v1764_v7 }
  0x13   :  { %v1558_v14 = vld [vmem:[%s3564_s0 + $0x20] sm:$0xf]  ;;  %v2201_v15 = vld [vmem:[%s3564_s0 + $0x28] sm:$0xf0]  ;;  %v2549_v17 = vor.u32 %v2197_v10, %v1538_v9  ;;  %v2551_v18 = vor.u32 %v2196_v11, %v1540_v13  ;;  %v2250_v20 = vld [vmem:[%s3563_s1 + $0x134] sm:$0xf] }
  0x14   :  { %392 = vmatpush.bf16.msra.mxu0 %v1635_v43  ;;  %v2553_v19 = vor.u32 %v2201_v15, %v1558_v14  ;;  %v1756_v21 = vld [vmem:[%s3563_s1 + $0x138] sm:$0xf0]  ;;  %v2238_v22 = vld [vmem:[%s3563_s1 + $0xd4] sm:$0xf]  ;;  %v1550_v26 = vld [vmem:[%s3564_s0 + $0x18] sm:$0xf] }
  0x15   :  { %1768 = vmatmul.msk.bf16.vlgmr.msra.gmra.mxu2 %vm369_vm0, %v2467_v42  ;;  %431 = vmatpush.bf16.msra.mxu1 %v1699_v45  ;;  %v1759_v23 = vor.u32 %v2250_v20, %v1756_v21  ;;  %v1708_v24 = vld [vmem:[%s3563_s1 + $0xd8] sm:$0xf0]  ;;  %v2200_v27 = vld [vmem:[%s3564_s0 + $0x20] sm:$0xf0]  ;;  %v1552_v29 = vld [vmem:[%s3564_s0 + $0x24] sm:$0xf0] }
  0x16   :  { %544 = vmatpush.bf16.msrb.mxu2 %v1735_v51  ;;  %v1711_v25 = vor.u32 %v2238_v22, %v1708_v24  ;;  %v2199_v28 = vld [vmem:[%s3564_s0 + $0x1c] sm:$0xf]  ;;  %v1570_v30 = vld [vmem:[%s3564_s0 + $0x38] sm:$0xf]  ;;  %v2204_v31 = vld [vmem:[%s3564_s0 + $0x40] sm:$0xf0]  ;;  %v2589_v32 = vor.u32 %v2200_v27, %v1550_v26 }
  0x17   :  { %v2591_v33 = vor.u32 %v2199_v28, %v1552_v29  ;;  %v2593_v34 = vor.u32 %v2204_v31, %v1570_v30  ;;  %v2228_v35 = vld [vmem:[%s3563_s1 + $0x84] sm:$0xf]  ;;  %v1668_v36 = vld [vmem:[%s3563_s1 + $0x88] sm:$0xf0]  ;;  %v2226_v40 = vld [vmem:[%s3563_s1 + $0x74] sm:$0xf] }
  0x18   :  { %393 = vmatpush.bf16.msra.mxu0 %v1627_v52  ;;  %v1671_v37 = vor.u32 %v2228_v35, %v1668_v36  ;;  %v2236_v38 = vld [vmem:[%s3563_s1 + $0xc4] sm:$0xf]  ;;  %v1700_v39 = vld [vmem:[%s3563_s1 + $0xc8] sm:$0xf0]  ;;  %v1660_v43 = vld [vmem:[%s3563_s1 + $0x78] sm:$0xf0] }
  0x19   :  { %432 = vmatpush.bf16.msra.mxu1 %v1691_v55  ;;  %v1703_v41 = vor.u32 %v2236_v38, %v1700_v39  ;;  %v2224_v44 = vld [vmem:[%s3563_s1 + $0x64] sm:$0xf]  ;;  %v1663_v45 = vor.u32 %v2226_v40, %v1660_v43  ;;  %v1652_v46 = vld [vmem:[%s3563_s1 + $0x68] sm:$0xf0]  ;;  %v2222_v51 = vld [vmem:[%s3563_s1 + $0x54] sm:$0xf] }
  0x1a   :  { %545 = vmatpush.bf16.msrb.mxu2 %v1727_v59  ;;  %505 = vmatpush.bf16.msra.mxu3 %v1671_v37  ;;  %v2248_v47 = vld [vmem:[%s3563_s1 + $0x124] sm:$0xf]  ;;  %v1748_v48 = vld [vmem:[%s3563_s1 + $0x128] sm:$0xf0]  ;;  %v1655_v50 = vor.u32 %v2224_v44, %v1652_v46  ;;  %v1644_v52 = vld [vmem:[%s3563_s1 + $0x58] sm:$0xf0] }
  0x1b   :  { %v1751_v49 = vor.u32 %v2248_v47, %v1748_v48  ;;  %v1562_v53 = vld [vmem:[%s3564_s0 + $0x30] sm:$0xf]  ;;  %v2203_v54 = vld [vmem:[%s3564_s0 + $0x38] sm:$0xf0]  ;;  %v2202_v55 = vld [vmem:[%s3564_s0 + $0x34] sm:$0xf]  ;;  %v1647_v59 = vor.u32 %v2222_v51, %v1644_v52 }
  0x1c   :  { %394 = vmatpush.bf16.msra.mxu0 %v1619_v63  ;;  %v1564_v56 = vld [vmem:[%s3564_s0 + $0x3c] sm:$0xf0]  ;;  %v1582_v57 = vld [vmem:[%s3564_s0 + $0x50] sm:$0xf]  ;;  %v2207_v58 = vld [vmem:[%s3564_s0 + $0x58] sm:$0xf0]  ;;  %v2653_v60 = vor.u32 %v2203_v54, %v1562_v53 }
  0x1d   :  { %433 = vmatpush.bf16.msra.mxu1 %v1683_v0  ;;  %v2655_v61 = vor.u32 %v2202_v55, %v1564_v56  ;;  %v2657_v62 = vor.u32 %v2207_v58, %v1582_v57  ;;  %v2220_v63 = vld [vmem:[%s3563_s1 + $0x44] sm:$0xf]  ;;  %v1636_v0 = vld [vmem:[%s3563_s1 + $0x48] sm:$0xf0]  ;;  %v2234_v2 = vld [vmem:[%s3563_s1 + $0xb4] sm:$0xf] }
  0x1e   :  { %546 = vmatpush.bf16.msrb.mxu2 %v1719_v4  ;;  %506 = vmatpush.bf16.msra.mxu3 %v1663_v45  ;;  %v1639_v1 = vor.u32 %v2220_v63, %v1636_v0  ;;  %v1692_v3 = vld [vmem:[%s3563_s1 + $0xb8] sm:$0xf0]  ;;  %v2218_v4 = vld [vmem:[%s3563_s1 + $0x34] sm:$0xf]  ;;  %v2216_v7 = vld [vmem:[%s3563_s1 + $0x24] sm:$0xf] }
  0x1f   :  { %v1695_v5 = vor.u32 %v2234_v2, %v1692_v3  ;;  %v1628_v6 = vld [vmem:[%s3563_s1 + $0x38] sm:$0xf0]  ;;  %v1620_v9 = vld [vmem:[%s3563_s1 + $0x28] sm:$0xf0]  ;;  %v2232_v10 = vld [vmem:[%s3563_s1 + $0xa4] sm:$0xf] }
  0x20   :  { %395 = vmatpush.bf16.msra.mxu0 %v1611_v8  ;;  %v1631_v8 = vor.u32 %v2218_v4, %v1628_v6  ;;  %v1684_v11 = vld [vmem:[%s3563_s1 + $0xa8] sm:$0xf0]  ;;  %v2230_v13 = vld [vmem:[%s3563_s1 + $0x94] sm:$0xf]  ;;  %v1676_v14 = vld [vmem:[%s3563_s1 + $0x98] sm:$0xf0]  ;;  %v1623_v15 = vor.u32 %v2216_v7, %v1620_v9 }
  0x21   :  { %434 = vmatpush.bf16.msra.mxu1 %v1675_v12  ;;  %v1687_v12 = vor.u32 %v2232_v10, %v1684_v11  ;;  %v1612_v20 = vld [vmem:[%s3563_s1 + $0x18] sm:$0xf0]  ;;  %v1679_v21 = vor.u32 %v2230_v13, %v1676_v14  ;;  %v1574_v22 = vld [vmem:[%s3564_s0 + $0x48] sm:$0xf]  ;;  %v2205_v24 = vld [vmem:[%s3564_s0 + $0x4c] sm:$0xf] }
  0x22   :  { %547 = vmatpush.bf16.msrb.mxu2 %v1711_v25  ;;  %507 = vmatpush.bf16.msra.mxu3 %v1655_v50  ;;  %v1576_v25 = vld [vmem:[%s3564_s0 + $0x54] sm:$0xf0]  ;;  %v1594_v26 = vld [vmem:[%s3564_s0 + $0x68] sm:$0xf]  ;;  %v2210_v27 = vld [vmem:[%s3564_s0 + $0x70] sm:$0xf0] }
  0x23   :  { %396 = vmatmul.bf16.vlgmr.msra.gmra.mxu0 %v2549_v17  ;;  %v1579_v30 = vor.u32 %v2205_v24, %v1576_v25  ;;  %v2723_v31 = vor.u32 %v2210_v27, %v1594_v26  ;;  %v2246_v35 = vld [vmem:[%s3563_s1 + $0x114] sm:$0xf]  ;;  %v1740_v36 = vld [vmem:[%s3563_s1 + $0x118] sm:$0xf0]  ;;  %v1586_v38 = vld [vmem:[%s3564_s0 + $0x60] sm:$0xf] }
  0x24   :  { %587 = vmatpush.bf16.msrb.mxu0 %v1767_v16  ;;  %435 = vmatmul.bf16.vlgmr.msra.gmra.mxu1 %v2551_v18  ;;  %v2214_v16 = vld [vmem:[%s3563_s1 + $0x14] sm:$0xf]  ;;  %v1743_v37 = vor.u32 %v2246_v35, %v1740_v36  ;;  %v2209_v39 = vld [vmem:[%s3564_s0 + $0x68] sm:$0xf0]  ;;  %v2208_v40 = vld [vmem:[%s3564_s0 + $0x64] sm:$0xf] }
  0x25   :  { %1769 = vmatmul.msk.bf16.gmra.mxu2 %vm369_vm0, %v2553_v19  ;;  %v1615_v28 = vor.u32 %v2214_v16, %v1612_v20  ;;  %v2213_v43 = vld [vmem:[%s3564_s0 + $0x88] sm:$0xf0]  ;;  %v1587_v44 = vor.u32 %v2209_v39, %v1586_v38  ;;  %v1598_v47 = vld [vmem:[%s3564_s0 + $0x78] sm:$0xf]  ;;  %v2212_v48 = vld [vmem:[%s3564_s0 + $0x80] sm:$0xf0] }
  0x26   :  { %548 = vmatpush.bf16.msrb.mxu2 %v1703_v41  ;;  %508 = vmatpush.bf16.msra.mxu3 %v1647_v59  ;;  %v1588_v41 = vld [vmem:[%s3564_s0 + $0x6c] sm:$0xf0]  ;;  %v1600_v50 = vld [vmem:[%s3564_s0 + $0x84] sm:$0xf0]  ;;  %v1599_v51 = vor.u32 %v2212_v48, %v1598_v47  ;;  %v1902_v24 = vld [vmem:[%s3563_s1 + $0x240] sm:$0xf] }
  0x27   :  { %v1591_v45 = vor.u32 %v2208_v40, %v1588_v41  ;;  %v2285_v25 = vld [vmem:[%s3563_s1 + $0x244] sm:$0xf0]  ;;  %v1838_v26 = vld [vmem:[%s3563_s1 + $0x1c0] sm:$0xf]  ;;  %v1894_v36 = vld [vmem:[%s3563_s1 + $0x230] sm:$0xf] }
  0x28   :  { %588 = vmatpush.bf16.msrb.mxu0 %v1759_v23  ;;  %v2206_v23 = vld [vmem:[%s3564_s0 + $0x50] sm:$0xf0]  ;;  %v2267_v47 = vld [vmem:[%s3563_s1 + $0x1b4] sm:$0xf0] }
  0x29   :  { %v1575_v29 = vor.u32 %v2206_v23, %v1574_v22 }
  0x2a   :  { %509 = vmatpush.bf16.msra.mxu3 %v1639_v1  ;;  %549 = vmatpush.bf16.msrb.mxu2 %v1695_v5 }
  0x2c   :  { %589 = vmatpush.bf16.msrb.mxu0 %v1751_v49  ;;  %v2211_v49 = vld [vmem:[%s3564_s0 + $0x7c] sm:$0xf] }
  0x2d   :  { %v1603_v52 = vor.u32 %v2211_v49, %v1600_v50 }
  0x2e   :  { %510 = vmatpush.bf16.msra.mxu3 %v1631_v8  ;;  %550 = vmatpush.bf16.msrb.mxu2 %v1687_v12 }
  0x30   :  { %590 = vmatpush.bf16.msrb.mxu0 %v1743_v37  ;;  %v2283_v37 = vld [vmem:[%s3563_s1 + $0x234] sm:$0xf0] }
  0x31   :  { %v1895_v39 = vor.u32 %v2283_v37, %v1894_v36  ;;  %v1870_v36 = vld [vmem:[%s3563_s1 + $0x200] sm:$0xf] }
  0x32   :  { %511 = vmatpush.bf16.msra.mxu3 %v1623_v15  ;;  %551 = vmatpush.bf16.msrb.mxu2 %v1679_v21 }
  0x33   :  { %401 = vmatmul.bf16.gmra.mxu0 %v2589_v32 }
  0x34   :  { %440 = vmatmul.bf16.gmra.mxu1 %v2591_v33 }
  0x35   :  { %1770 = vmatmul.msk.bf16.gmra.mxu2 %vm369_vm0, %v2593_v34 }
  0x36   :  { %512 = vmatpush.bf16.msra.mxu3 %v1615_v28  ;;  %v1903_v28 = vor.u32 %v2285_v25, %v1902_v24  ;;  %v1798_v25 = vld [vmem:[%s3563_s1 + $0x170] sm:$0xf] }
  0x39   :  { %513 = vmatmul.bf16.vlgmr.msra.gmra.mxu3 %v2549_v17  ;;  %v1606_v17 = vld [vmem:[%s3564_s0 + $0x80] sm:$0xf] }
  0x3a   :  { %v1607_v46 = vor.u32 %v2213_v43, %v1606_v17  ;;  %1152 = vmatpush.bf16.msrb.mxu3 %v1903_v28 }
  0x3e   :  { %1153 = vmatpush.bf16.msrb.mxu3 %v1895_v39  ;;  %v2284_v39 = vld [vmem:[%s3563_s1 + $0x244] sm:$0xf] }
  0x43   :  { %406 = vmatmul.bf16.gmra.mxu0 %v2653_v60 }
  0x44   :  { %445 = vmatmul.bf16.gmra.mxu1 %v2655_v61 }
  0x45   :  { %1771 = vmatmul.msk.bf16.gmra.mxu2 %vm369_vm0, %v2657_v62 }
  0x49   :  { %518 = vmatmul.bf16.gmra.mxu3 %v2589_v32 }
  0x53   :  { %411 = vmatmul.bf16.gmra.mxu0 %v1575_v29 }
  0x54   :  { %450 = vmatmul.bf16.gmra.mxu1 %v1579_v30 }
  0x55   :  { %1772 = vmatmul.msk.bf16.gmra.mxu2 %vm369_vm0, %v2723_v31 }
  0x59   :  { %523 = vmatmul.bf16.gmra.mxu3 %v2653_v60 }
  0x63   :  { %416 = vmatmul.bf16.gmra.mxu0 %v1587_v44 }
  0x64   :  { %455 = vmatmul.bf16.gmra.mxu1 %v1591_v45 }
  0x65   :  { %1773 = vmatmul.msk.bf16.gmra.mxu2 %vm369_vm0, %v1607_v46 }
  0x69   :  { %528 = vmatmul.bf16.gmra.mxu3 %v1575_v29  ;;  %v2269_v29 = vld [vmem:[%s3563_s1 + $0x1c4] sm:$0xf0] }
  0x73   :  { %421 = vmatmul.bf16.gmra.mxu0 %v1599_v51 }
  0x74   :  { %460 = vmatmul.bf16.gmra.mxu1 %v1603_v52 }
  0x75   :  { %552 = vmatmul.bf16.vlgmr.msrb.gmra.mxu2 %v2551_v18 }
  0x79   :  { %533 = vmatmul.bf16.gmra.mxu3 %v1587_v44 }
  0x83   :  { %1774 = vmatmul.msk.bf16.vlgmr.msrb.gmra.mxu0 %vm369_vm0, %v2467_v42 }
  0x85   :  { %557 = vmatmul.bf16.gmra.mxu2 %v2591_v33 }
  0x89   :  { %538 = vmatmul.bf16.gmra.mxu3 %v1599_v51 }
  0x93   :  { %1775 = vmatmul.msk.bf16.gmra.mxu0 %vm369_vm0, %v2553_v19 }
  0x95   :  { %562 = vmatmul.bf16.gmra.mxu2 %v2655_v61 }
  0x98   :  { %v475_v32 = vpop.f32.mrf.mxu2 }
  0xa0   :  { %v2774_v53 = vpop.f32.mrf.mxu2  ;;  %v397_v54 = vpop.f32.mrf.mxu0 }
  0xa1   :  { %v436_v55 = vpop.f32.mrf.mxu1 }
  0xa2   :  { %v437_v18 = vadd.f32 %v436_v55, %v397_v54  ;;  %v1886_v55 = vld [vmem:[%s3563_s1 + $0x220] sm:$0xf] }
  0xa3   :  { %1776 = vmatmul.msk.bf16.gmra.mxu0 %vm369_vm0, %v2593_v34 }
  0xa4   :  { %v2778_v56 = vadd.f32 %v475_v32, %v437_v18  ;;  %v2281_v18 = vld [vmem:[%s3563_s1 + $0x224] sm:$0xf0] }
  0xa5   :  { %567 = vmatmul.bf16.gmra.mxu2 %v1579_v30 }
  0xa8   :  { %v480_v42 = vpop.f32.mrf.mxu2  ;;  %v2780_v33 = vpop.f32.mrf.mxu0 }
  0xa9   :  { %v2782_v19 = vpop.f32.mrf.mxu1 }
  0xb0   :  { %v2784_v57 = vpop.f32.mrf.mxu2  ;;  %v402_v58 = vpop.f32.mrf.mxu0 }
  0xb1   :  { %v441_v59 = vpop.f32.mrf.mxu1 }
  0xb2   :  { %v442_v60 = vadd.f32 %v441_v59, %v402_v58  ;;  %v1887_v59 = vor.u32 %v2281_v18, %v1886_v55  ;;  %v2301_v55 = vld [vmem:[%s3563_s1 + $0x2c4] sm:$0xf0] }
  0xb3   :  { %1777 = vmatmul.msk.bf16.gmra.mxu0 %vm369_vm0, %v2657_v62 }
  0xb4   :  { %v2788_v61 = vadd.f32 %v480_v42, %v442_v60  ;;  %v1822_v42 = vld [vmem:[%s3563_s1 + $0x1a0] sm:$0xf]  ;;  %v2265_v60 = vld [vmem:[%s3563_s1 + $0x1a4] sm:$0xf0]  ;;  %1154 = vmatpush.bf16.msrb.mxu3 %v1887_v59 }
  0xb5   :  { %572 = vmatmul.bf16.gmra.mxu2 %v1591_v45 }
  0xb8   :  { %v485_v34 = vpop.f32.mrf.mxu2  ;;  %v2790_v63 = vpop.f32.mrf.mxu0 }
  0xb9   :  { %v2792_v0 = vpop.f32.mrf.mxu1 }
  0xbc   :  { %v2827_v41 = vpop.f32.mrf.mxu3 }
  0xc0   :  { %v487_v1 = vpop.f32.mrf.mxu2  ;;  %v407_v2 = vpop.f32.mrf.mxu0 }
  0xc1   :  { %v446_v3 = vpop.f32.mrf.mxu1 }
  0xc2   :  { %v447_v4 = vadd.f32 %v446_v3, %v407_v2  ;;  %v1814_v2 = vld [vmem:[%s3563_s1 + $0x190] sm:$0xf]  ;;  %v2263_v3 = vld [vmem:[%s3563_s1 + $0x194] sm:$0xf0] }
  0xc3   :  { %1778 = vmatmul.msk.bf16.gmra.mxu0 %vm369_vm0, %v2723_v31  ;;  %v1839_v31 = vor.u32 %v2269_v29, %v1838_v26  ;;  %v2259_v26 = vld [vmem:[%s3563_s1 + $0x174] sm:$0xf0] }
  0xc4   :  { %v2796_v5 = vadd.f32 %v485_v34, %v447_v4  ;;  %v1823_v34 = vor.u32 %v2265_v60, %v1822_v42  ;;  %v1799_v28 = vor.u32 %v2259_v26, %v1798_v25  ;;  %v1854_v60 = vld [vmem:[%s3563_s1 + $0x1e0] sm:$0xf]  ;;  %v2297_v25 = vld [vmem:[%s3563_s1 + $0x2a4] sm:$0xf0] }
  0xc5   :  { %577 = vmatmul.bf16.gmra.mxu2 %v1603_v52  ;;  %1138 = vmatpush.bf16.msrb.mxu1 %v1839_v31  ;;  %v2839_v52 = vpop.f32.mrf.mxu3  ;;  %v1790_v31 = vld [vmem:[%s3563_s1 + $0x160] sm:$0xf] }
  0xc6   :  { %v2030_v26 = vld [vmem:[%s3563_s1 + $0x340] sm:$0xf] }
  0xc8   :  { %v490_v6 = vpop.f32.mrf.mxu2  ;;  %v409_v62 = vpop.f32.mrf.mxu0 }
  0xc9   :  { %v448_v7 = vpop.f32.mrf.mxu1 }
  0xca   :  { %v449_v8 = vadd.f32 %v448_v7, %v409_v62 }
  0xcc   :  { %v2798_v9 = vadd.f32 %v487_v1, %v449_v8 }
  0xd0   :  { %v492_v10 = vpop.f32.mrf.mxu2  ;;  %v412_v11 = vpop.f32.mrf.mxu0 }
  0xd1   :  { %v451_v12 = vpop.f32.mrf.mxu1 }
  0xd2   :  { %v452_v13 = vadd.f32 %v451_v12, %v412_v11  ;;  %v1806_v11 = vld [vmem:[%s3563_s1 + $0x180] sm:$0xf]  ;;  %v2261_v12 = vld [vmem:[%s3563_s1 + $0x184] sm:$0xf0] }
  0xd3   :  { %1779 = vmatmul.msk.bf16.gmra.mxu0 %vm369_vm0, %v1607_v46  ;;  %v1830_v46 = vld [vmem:[%s3563_s1 + $0x1b0] sm:$0xf] }
  0xd4   :  { %v2801_v14 = vadd.f32 %v490_v6, %v452_v13  ;;  %v1831_v49 = vor.u32 %v2267_v47, %v1830_v46  ;;  %v1815_v6 = vor.u32 %v2263_v3, %v1814_v2  ;;  %v1878_v13 = vld [vmem:[%s3563_s1 + $0x210] sm:$0xf]  ;;  %v2300_v2 = vld [vmem:[%s3563_s1 + $0x2c4] sm:$0xf] }
  0xd5   :  { %v1782_v47 = vld [vmem:[%s3563_s1 + $0x150] sm:$0xf] }
  0xd6   :  { %v622_v15 = vmax.f32 %v2778_v56, %v2801_v14  ;;  %1139 = vmatpush.bf16.msrb.mxu1 %v1831_v49  ;;  %v1862_v49 = vld [vmem:[%s3563_s1 + $0x1f0] sm:$0xf]  ;;  %v2094_v56 = vld [vmem:[%s3563_s1 + $0x3c0] sm:$0xf]  ;;  %v2333_v14 = vld [vmem:[%s3563_s1 + $0x3c4] sm:$0xf0] }
  0xd8   :  { %v495_v16 = vpop.f32.mrf.mxu2  ;;  %v414_v20 = vpop.f32.mrf.mxu0 }
  0xd9   :  { %v453_v21 = vpop.f32.mrf.mxu1 }
  0xda   :  { %v454_v22 = vadd.f32 %v453_v21, %v414_v20  ;;  %1140 = vmatpush.bf16.msrb.mxu1 %v1823_v34  ;;  %v1807_v20 = vor.u32 %v2261_v12, %v1806_v11  ;;  %v2279_v21 = vld [vmem:[%s3563_s1 + $0x214] sm:$0xf0]  ;;  %v2273_v34 = vld [vmem:[%s3563_s1 + $0x1e4] sm:$0xf0] }
  0xdb   :  { %v1855_v3 = vor.u32 %v2273_v34, %v1854_v60  ;;  %v2014_v60 = vld [vmem:[%s3563_s1 + $0x320] sm:$0xf] }
  0xdc   :  { %v2805_v23 = vadd.f32 %v492_v10, %v454_v22  ;;  %v2865_v10 = vpop.f32.mrf.mxu3  ;;  %v1879_v22 = vor.u32 %v2279_v21, %v1878_v13 }
  0xde   :  { %1141 = vmatpush.bf16.msrb.mxu1 %v1815_v6  ;;  %1155 = vmatpush.bf16.msrb.mxu3 %v1879_v22  ;;  %v1968_v6 = vld [vmem:[%s3563_s1 + $0x2c8] sm:$0xf0]  ;;  %v1950_v22 = vld [vmem:[%s3563_s1 + $0x2a0] sm:$0xf] }
  0xdf   :  { %v1971_v11 = vor.u32 %v2300_v2, %v1968_v6  ;;  %v2313_v6 = vld [vmem:[%s3563_s1 + $0x324] sm:$0xf0] }
  0xe0   :  { %v497_v27 = vpop.f32.mrf.mxu2  ;;  %v417_v30 = vpop.f32.mrf.mxu0 }
  0xe1   :  { %v456_v35 = vpop.f32.mrf.mxu1  ;;  %1236 = vmatpush.bf16.msra.mxu0 %v1971_v11  ;;  %v1960_v11 = vld [vmem:[%s3563_s1 + $0x2b8] sm:$0xf0] }
  0xe2   :  { %v457_v38 = vadd.f32 %v456_v35, %v417_v30  ;;  %1142 = vmatpush.bf16.msrb.mxu1 %v1807_v20  ;;  %v2257_v35 = vld [vmem:[%s3563_s1 + $0x164] sm:$0xf0]  ;;  %v2271_v20 = vld [vmem:[%s3563_s1 + $0x1d4] sm:$0xf0] }
  0xe3   :  { %v1791_v37 = vor.u32 %v2257_v35, %v1790_v31  ;;  %v1951_v31 = vor.u32 %v2297_v25, %v1950_v22  ;;  %v2317_v35 = vld [vmem:[%s3563_s1 + $0x344] sm:$0xf0]  ;;  %v1926_v25 = vld [vmem:[%s3563_s1 + $0x270] sm:$0xf] }
  0xe4   :  { %v2825_v40 = vadd.f32 %v495_v16, %v457_v38  ;;  %v2277_v38 = vld [vmem:[%s3563_s1 + $0x204] sm:$0xf0] }
  0xe6   :  { %v626_v17 = vmax.f32 %v2788_v61, %v2825_v40  ;;  %1143 = vmatpush.bf16.msrb.mxu1 %v1799_v28  ;;  %v2268_v61 = vld [vmem:[%s3563_s1 + $0x1c4] sm:$0xf] }
  0xe8   :  { %v500_v43 = vpop.f32.mrf.mxu2  ;;  %v419_v44 = vpop.f32.mrf.mxu0 }
  0xe9   :  { %v458_v45 = vpop.f32.mrf.mxu1 }
  0xea   :  { %v459_v48 = vadd.f32 %v458_v45, %v419_v44  ;;  %v2911_v44 = vpop.f32.mrf.mxu3  ;;  %v1871_v45 = vor.u32 %v2277_v38, %v1870_v36  ;;  %1144 = vmatpush.bf16.msrb.mxu1 %v1791_v37  ;;  %v2282_v37 = vld [vmem:[%s3563_s1 + $0x234] sm:$0xf]  ;;  %v1896_v38 = vld [vmem:[%s3563_s1 + $0x238] sm:$0xf0] }
  0xec   :  { %v2837_v50 = vadd.f32 %v497_v27, %v459_v48  ;;  %1156 = vmatpush.bf16.msrb.mxu3 %v1871_v45  ;;  %v2255_v48 = vld [vmem:[%s3563_s1 + $0x154] sm:$0xf0]  ;;  %v1942_v45 = vld [vmem:[%s3563_s1 + $0x290] sm:$0xf] }
  0xf0   :  { %v502_v51 = vpop.f32.mrf.mxu2  ;;  %v422_v32 = vpop.f32.mrf.mxu0 }
  0xf1   :  { %v461_v54 = vpop.f32.mrf.mxu1 }
  0xf2   :  { %v462_v58 = vadd.f32 %v461_v54, %v422_v32  ;;  %v2275_v32 = vld [vmem:[%s3563_s1 + $0x1f4] sm:$0xf0]  ;;  %v1966_v54 = vld [vmem:[%s3563_s1 + $0x2c0] sm:$0xf]  ;;  %v2953_v13 = vpop.f32.mrf.mxu3 }
  0xf3   :  { %v1863_v42 = vor.u32 %v2275_v32, %v1862_v49  ;;  %v2315_v49 = vld [vmem:[%s3563_s1 + $0x334] sm:$0xf0]  ;;  %v2280_v32 = vld [vmem:[%s3563_s1 + $0x224] sm:$0xf] }
  0xf4   :  { %v2853_v1 = vadd.f32 %v500_v43, %v462_v58  ;;  %v1904_v43 = vld [vmem:[%s3563_s1 + $0x248] sm:$0xf0]  ;;  %v1967_v58 = vor.u32 %v2301_v55, %v1966_v54 }
  0xf5   :  { %v1907_v46 = vor.u32 %v2284_v39, %v1904_v43  ;;  %1157 = vmatpush.bf16.msrb.mxu3 %v1863_v42  ;;  %v2031_v39 = vor.u32 %v2317_v35, %v2030_v26  ;;  %v1899_v43 = vor.u32 %v2282_v37, %v1896_v38  ;;  %v1888_v54 = vld [vmem:[%s3563_s1 + $0x228] sm:$0xf0]  ;;  %v1934_v42 = vld [vmem:[%s3563_s1 + $0x280] sm:$0xf]  ;;  %v2291_v26 = vld [vmem:[%s3563_s1 + $0x274] sm:$0xf0] }
  0xf6   :  { %v630_v4 = vmax.f32 %v2796_v5, %v2853_v1  ;;  %v1891_v55 = vor.u32 %v2280_v32, %v1888_v54  ;;  %v1927_v35 = vor.u32 %v2291_v26, %v1926_v25  ;;  %v2311_v37 = vld [vmem:[%s3563_s1 + $0x314] sm:$0xf0]  ;;  %v1998_v32 = vld [vmem:[%s3563_s1 + $0x300] sm:$0xf]  ;;  %v1990_v25 = vld [vmem:[%s3563_s1 + $0x2f0] sm:$0xf] }
  0xf7   :  { %1222 = vmatpush.bf16.msra.mxu2 %v1907_v46  ;;  %v2295_v46 = vld [vmem:[%s3563_s1 + $0x294] sm:$0xf0]  ;;  %v2321_v5 = vld [vmem:[%s3563_s1 + $0x364] sm:$0xf0]  ;;  %v2260_v1 = vld [vmem:[%s3563_s1 + $0x184] sm:$0xf] }
  0xf8   :  { %v2863_v62 = vpop.f32.mrf.mxu2  ;;  %v424_v7 = vpop.f32.mrf.mxu0 }
  0xf9   :  { %v463_v8 = vpop.f32.mrf.mxu1  ;;  %1158 = vmatpush.bf16.msrb.mxu3 %v1855_v3 }
  0xfa   :  { %v464_v16 = vadd.f32 %v463_v8, %v424_v7  ;;  %v1958_v7 = vld [vmem:[%s3563_s1 + $0x2b0] sm:$0xf]  ;;  %v2299_v8 = vld [vmem:[%s3563_s1 + $0x2b4] sm:$0xf0]  ;;  %v3012_v2 = vpop.f32.mrf.mxu3 }
  0xfb   :  { %v1959_v12 = vor.u32 %v2299_v8, %v1958_v7  ;;  %1223 = vmatpush.bf16.msra.mxu2 %v1899_v43  ;;  %v2298_v8 = vld [vmem:[%s3563_s1 + $0x2b4] sm:$0xf]  ;;  %v1872_v43 = vld [vmem:[%s3563_s1 + $0x208] sm:$0xf0] }
  0xfc   :  { %v2879_v24 = vadd.f32 %v502_v51, %v464_v16  ;;  %v1783_v51 = vor.u32 %v2255_v48, %v1782_v47  ;;  %v1846_v16 = vld [vmem:[%s3563_s1 + $0x1d0] sm:$0xf]  ;;  %v1943_v48 = vor.u32 %v2295_v46, %v1942_v45  ;;  %v2296_v45 = vld [vmem:[%s3563_s1 + $0x2a4] sm:$0xf] }
  0xfd   :  { %v1847_v21 = vor.u32 %v2271_v20, %v1846_v16  ;;  %v2022_v47 = vld [vmem:[%s3563_s1 + $0x330] sm:$0xf]  ;;  %v2278_v16 = vld [vmem:[%s3563_s1 + $0x214] sm:$0xf]  ;;  %v1963_v20 = vor.u32 %v2298_v8, %v1960_v11 }
  0xfe   :  { %v632_v27 = vmax.f32 %v2798_v9, %v2879_v24  ;;  %1145 = vmatpush.bf16.msrb.mxu1 %v1783_v51  ;;  %v2023_v51 = vor.u32 %v2315_v49, %v2022_v47  ;;  %v1952_v47 = vld [vmem:[%s3563_s1 + $0x2a8] sm:$0xf0]  ;;  %v1918_v49 = vld [vmem:[%s3563_s1 + $0x260] sm:$0xf]  ;;  %v2294_v8 = vld [vmem:[%s3563_s1 + $0x294] sm:$0xf] }
  0xff   :  { %1159 = vmatpush.bf16.msrb.mxu3 %v1847_v21  ;;  %1224 = vmatpush.bf16.msra.mxu2 %v1891_v55  ;;  %v1880_v21 = vld [vmem:[%s3563_s1 + $0x218] sm:$0xf0]  ;;  %v2314_v9 = vld [vmem:[%s3563_s1 + $0x334] sm:$0xf] }
 0x100   :  { %v2889_v29 = vpop.f32.mrf.mxu2  ;;  %v2891_v30 = vpop.f32.mrf.mxu0  ;;  %v1883_v22 = vor.u32 %v2278_v16, %v1880_v21  ;;  %1237 = vmatpush.bf16.msra.mxu0 %v1963_v20  ;;  %v1944_v16 = vld [vmem:[%s3563_s1 + $0x298] sm:$0xf0]  ;;  %v1910_v21 = vld [vmem:[%s3563_s1 + $0x250] sm:$0xf] }
 0x101   :  { %v1947_v20 = vor.u32 %v2294_v8, %v1944_v16  ;;  %v2303_v16 = vld [vmem:[%s3563_s1 + $0x2d4] sm:$0xf0]  ;;  %v2024_v24 = vld [vmem:[%s3563_s1 + $0x338] sm:$0xf0] }
 0x102   :  { %1166 = vmatpush.bf16.msra.mxu1 %v1967_v58  ;;  %v2293_v58 = vld [vmem:[%s3563_s1 + $0x284] sm:$0xf0]  ;;  %v529_v11 = vpop.f32.mrf.mxu3 }
 0x103   :  { %1180 = vmatpush.bf16.msra.mxu3 %v2031_v39  ;;  %v1935_v3 = vor.u32 %v2293_v58, %v1934_v42  ;;  %1225 = vmatpush.bf16.msra.mxu2 %v1883_v22  ;;  %v2276_v39 = vld [vmem:[%s3563_s1 + $0x204] sm:$0xf]  ;;  %v2309_v42 = vld [vmem:[%s3563_s1 + $0x304] sm:$0xf0]  ;;  %v2287_v22 = vld [vmem:[%s3563_s1 + $0x254] sm:$0xf0] }
 0x104   :  { %v1875_v46 = vor.u32 %v2276_v39, %v1872_v43  ;;  %v1911_v26 = vor.u32 %v2287_v22, %v1910_v21  ;;  %v2292_v39 = vld [vmem:[%s3563_s1 + $0x284] sm:$0xf] }
 0x105   :  { %v2288_v22 = vld [vmem:[%s3563_s1 + $0x264] sm:$0xf] }
 0x106   :  { %1167 = vmatpush.bf16.msra.mxu1 %v1959_v12  ;;  %v2015_v12 = vor.u32 %v2313_v6, %v2014_v60  ;;  %v1999_v60 = vor.u32 %v2309_v42, %v1998_v32  ;;  %v1864_v6 = vld [vmem:[%s3563_s1 + $0x1f8] sm:$0xf0] }
 0x107   :  { %1181 = vmatpush.bf16.msra.mxu3 %v2023_v51  ;;  %v2289_v51 = vld [vmem:[%s3563_s1 + $0x264] sm:$0xf0]  ;;  %1226 = vmatpush.bf16.msra.mxu2 %v1875_v46  ;;  %v1848_v42 = vld [vmem:[%s3563_s1 + $0x1d8] sm:$0xf0] }
 0x108   :  { %v2931_v18 = vpop.f32.mrf.mxu2  ;;  %v2933_v59 = vpop.f32.mrf.mxu0  ;;  %v1919_v55 = vor.u32 %v2289_v51, %v1918_v49 }
 0x10a   :  { %1168 = vmatpush.bf16.msra.mxu1 %v1951_v31  ;;  %v2006_v31 = vld [vmem:[%s3563_s1 + $0x310] sm:$0xf] }
 0x10b   :  { %1182 = vmatpush.bf16.msra.mxu3 %v2015_v12  ;;  %v2007_v38 = vor.u32 %v2311_v37, %v2006_v31  ;;  %v2307_v31 = vld [vmem:[%s3563_s1 + $0x2f4] sm:$0xf0]  ;;  %v2272_v37 = vld [vmem:[%s3563_s1 + $0x1e4] sm:$0xf] }
 0x10e   :  { %1169 = vmatpush.bf16.msra.mxu1 %v1943_v48  ;;  %v1955_v48 = vor.u32 %v2296_v45, %v1952_v47  ;;  %v1936_v45 = vld [vmem:[%s3563_s1 + $0x288] sm:$0xf0]  ;;  %v1982_v47 = vld [vmem:[%s3563_s1 + $0x2e0] sm:$0xf] }
 0x10f   :  { %1183 = vmatpush.bf16.msra.mxu3 %v2007_v38  ;;  %v1856_v38 = vld [vmem:[%s3563_s1 + $0x1e8] sm:$0xf0]  ;;  %v1939_v46 = vor.u32 %v2292_v39, %v1936_v45  ;;  %v2286_v39 = vld [vmem:[%s3563_s1 + $0x254] sm:$0xf] }
 0x110   :  { %v2970_v28 = vpop.f32.mrf.mxu2  ;;  %v2975_v36 = vpop.f32.mrf.mxu0  ;;  %1238 = vmatpush.bf16.msra.mxu0 %v1955_v48  ;;  %v1859_v43 = vor.u32 %v2272_v37, %v1856_v38  ;;  %v2305_v48 = vld [vmem:[%s3563_s1 + $0x2e4] sm:$0xf0] }
 0x111   :  { %v1983_v51 = vor.u32 %v2305_v48, %v1982_v47 }
 0x112   :  { %1170 = vmatpush.bf16.msra.mxu1 %v1935_v3  ;;  %v2274_v3 = vld [vmem:[%s3563_s1 + $0x1f4] sm:$0xf] }
 0x113   :  { %v1867_v12 = vor.u32 %v2274_v3, %v1864_v6  ;;  %1184 = vmatpush.bf16.msra.mxu3 %v1999_v60  ;;  %v2290_v60 = vld [vmem:[%s3563_s1 + $0x274] sm:$0xf]  ;;  %v1928_v6 = vld [vmem:[%s3563_s1 + $0x278] sm:$0xf0] }
 0x114   :  { %1239 = vmatpush.bf16.msra.mxu0 %v1947_v20  ;;  %v1931_v8 = vor.u32 %v2290_v60, %v1928_v6  ;;  %v531_v20 = vpop.f32.mrf.mxu3 }
 0x115   :  { %1227 = vmatpush.bf16.msra.mxu2 %v1867_v12  ;;  %v1974_v12 = vld [vmem:[%s3563_s1 + $0x2d0] sm:$0xf] }
 0x116   :  { %1171 = vmatpush.bf16.msra.mxu1 %v1927_v35  ;;  %v1991_v35 = vor.u32 %v2307_v31, %v1990_v25  ;;  %v1975_v21 = vor.u32 %v2303_v16, %v1974_v12  ;;  %v1920_v25 = vld [vmem:[%s3563_s1 + $0x268] sm:$0xf0] }
 0x117   :  { %v1923_v31 = vor.u32 %v2288_v22, %v1920_v25  ;;  %v2095_v25 = vor.u32 %v2333_v14, %v2094_v56 }
 0x118   :  { %v3010_v34 = vpop.f32.mrf.mxu2  ;;  %v3017_v7 = vpop.f32.mrf.mxu0  ;;  %1185 = vmatpush.bf16.msra.mxu3 %v1991_v35  ;;  %1240 = vmatpush.bf16.msra.mxu0 %v1939_v46  ;;  %v554_v35 = vadd.f32 %v2863_v62, %v2827_v41  ;;  %v439_v62 = vadd.f32 %v2782_v19, %v2780_v33 }
 0x119   :  { %1228 = vmatpush.bf16.msra.mxu2 %v1859_v43  ;;  %v1912_v43 = vld [vmem:[%s3563_s1 + $0x258] sm:$0xf0] }
 0x11a   :  { %1172 = vmatpush.bf16.msra.mxu1 %v1919_v55  ;;  %v2270_v55 = vld [vmem:[%s3563_s1 + $0x1d4] sm:$0xf]  ;;  %v1915_v46 = vor.u32 %v2286_v39, %v1912_v43  ;;  %v593_v41 = vadd.f32 %v2891_v30, %v554_v35  ;;  %v478_v60 = vadd.f32 %v2774_v53, %v439_v62  ;;  %v2086_v35 = vld [vmem:[%s3563_s1 + $0x3b0] sm:$0xf]  ;;  %v2078_v43 = vld [vmem:[%s3563_s1 + $0x3a0] sm:$0xf] }
 0x11b   :  { %v1851_v3 = vor.u32 %v2270_v55, %v1848_v42 }
 0x11c   :  { %1186 = vmatpush.bf16.msra.mxu3 %v1983_v51  ;;  %1241 = vmatpush.bf16.msra.mxu0 %v1931_v8  ;;  %v534_v48 = vpop.f32.mrf.mxu3  ;;  %v556_v51 = vadd.f32 %v2889_v29, %v2839_v52  ;;  %v624_v8 = vmax.f32 %v478_v60, %v2805_v23  ;;  %v559_v52 = vadd.f32 %v2931_v18, %v2865_v10 }
 0x11d   :  { %1229 = vmatpush.bf16.msra.mxu2 %v1851_v3 }
 0x11e   :  { %1173 = vmatpush.bf16.msra.mxu1 %v1911_v26  ;;  %v595_v6 = vadd.f32 %v2933_v59, %v556_v51 }
 0x120   :  { %v3064_v54 = vpop.f32.mrf.mxu2  ;;  %v3069_v58 = vpop.f32.mrf.mxu0  ;;  %1187 = vmatpush.bf16.msra.mxu3 %v1975_v21  ;;  %1242 = vmatpush.bf16.msra.mxu0 %v1923_v31  ;;  %v598_v21 = vadd.f32 %v2975_v36, %v559_v52 }
 0x124   :  { %1243 = vmatpush.bf16.msra.mxu0 %v1915_v46  ;;  %v536_v59 = vpop.f32.mrf.mxu3 }
 0x128   :  { %v568_v49 = vpop.f32.mrf.mxu2  ;;  %v3113_v32 = vpop.f32.mrf.mxu0 }
 0x129   :  { %v569_v26 = vadd.f32 %v568_v49, %v529_v11  ;;  %v3150_v11 = vld [vmem:[%s3563_s1] sm:$0xff] }
 0x12a   :  { %v13_v49 = vunpack.c.l.bf16 %v3150_v11 }
 0x12c   :  { %v3165_v19 = vperm.slane %v13_v49, 0  ;;  %v539_v40 = vpop.f32.mrf.mxu3 }
 0x130   :  { %v570_v37 = vpop.f32.mrf.mxu2  ;;  %v607_v38 = vpop.f32.mrf.mxu0 }
 0x131   :  { %v608_v45 = vadd.f32 %v607_v38, %v569_v26  ;;  %v571_v55 = vadd.f32 %v570_v37, %v531_v20  ;;  %v2331_v37 = vld [vmem:[%s3563_s1 + $0x3b4] sm:$0xf0]  ;;  %v444_v38 = vadd.f32 %v2792_v0, %v2790_v63  ;;  %v2329_v63 = vld [vmem:[%s3563_s1 + $0x3a4] sm:$0xf0]  ;;  %v1840_v0 = vld [vmem:[%s3563_s1 + $0x1c8] sm:$0xf0] }
 0x132   :  { %v2087_v39 = vor.u32 %v2331_v37, %v2086_v35  ;;  %v2079_v51 = vor.u32 %v2329_v63, %v2078_v43  ;;  %v1816_v35 = vld [vmem:[%s3563_s1 + $0x198] sm:$0xf0]  ;;  %v2046_v43 = vld [vmem:[%s3563_s1 + $0x360] sm:$0xf] }
 0x133   :  { %v623_v47 = vmax.f32 %v593_v41, %v608_v45  ;;  %v561_v45 = vadd.f32 %v2970_v28, %v2911_v44  ;;  %v483_v44 = vadd.f32 %v2784_v57, %v444_v38  ;;  %v2266_v57 = vld [vmem:[%s3563_s1 + $0x1b4] sm:$0xf] }
 0x135   :  { %v634_v30 = vmax.f32 %v622_v15, %v623_v47  ;;  %v600_v28 = vadd.f32 %v3017_v7, %v561_v45  ;;  %v628_v60 = vmax.f32 %v483_v44, %v2837_v50  ;;  %v1832_v7 = vld [vmem:[%s3563_s1 + $0x1b8] sm:$0xf0]  ;;  %v566_v45 = vadd.f32 %v3064_v54, %v3012_v2  ;;  %v2319_v44 = vld [vmem:[%s3563_s1 + $0x354] sm:$0xf0] }
 0x136   :  { %v1835_v52 = vor.u32 %v2266_v57, %v1832_v7  ;;  %v2047_v2 = vor.u32 %v2321_v5, %v2046_v43  ;;  %v2027_v7 = vor.u32 %v2314_v9, %v2024_v24  ;;  %v2324_v43 = vld [vmem:[%s3563_s1 + $0x384] sm:$0xf]  ;;  %v2122_v24 = vld [vmem:[%s3563_s1 + $0x420] sm:$0xf] }
 0x137   :  { %v641_v16 = vadd.f32 %v3165_v19, %v634_v30  ;;  %v2327_v30 = vld [vmem:[%s3563_s1 + $0x394] sm:$0xf0]  ;;  %v605_v63 = vadd.f32 %v3113_v32, %v566_v45  ;;  %v2258_v32 = vld [vmem:[%s3563_s1 + $0x174] sm:$0xf]  ;;  %v2064_v45 = vld [vmem:[%s3563_s1 + $0x388] sm:$0xf0] }
 0x138   :  { %v573_v42 = vpop.f32.mrf.mxu2  ;;  %v609_v3 = vpop.f32.mrf.mxu0  ;;  %v2067_v5 = vor.u32 %v2324_v43, %v2064_v45 }
 0x139   :  { %v610_v33 = vadd.f32 %v609_v3, %v571_v55  ;;  %v574_v29 = vadd.f32 %v573_v42, %v534_v48  ;;  %v647_v18 = vmax.f32 %v641_v16, 0.0  ;;  %v1843_v55 = vor.u32 %v2268_v61, %v1840_v0  ;;  %v2070_v42 = vld [vmem:[%s3563_s1 + $0x390] sm:$0xf]  ;;  %v2325_v16 = vld [vmem:[%s3563_s1 + $0x384] sm:$0xf0] }
 0x13b   :  { %v625_v12 = vmax.f32 %v595_v6, %v610_v33  ;;  %v564_v33 = vadd.f32 %v3010_v34, %v2953_v13  ;;  %v2264_v13 = vld [vmem:[%s3563_s1 + $0x1a4] sm:$0xf]  ;;  %v1824_v34 = vld [vmem:[%s3563_s1 + $0x1a8] sm:$0xf0] }
 0x13d   :  { %v635_v53 = vmax.f32 %v624_v8, %v625_v12  ;;  %v2071_v12 = vor.u32 %v2327_v30, %v2070_v42  ;;  %v1792_v30 = vld [vmem:[%s3563_s1 + $0x168] sm:$0xf0] }
 0x13f   :  { %v642_v20 = vadd.f32 %v3165_v19, %v635_v53 }
 0x140   :  { %v575_v15 = vpop.f32.mrf.mxu2  ;;  %v612_v23 = vpop.f32.mrf.mxu0 }
 0x141   :  { %v613_v10 = vadd.f32 %v612_v23, %v574_v29  ;;  %v648_v22 = vmax.f32 %v642_v20, 0.0  ;;  %v576_v46 = vadd.f32 %v575_v15, %v536_v59  ;;  %v2062_v29 = vld [vmem:[%s3563_s1 + $0x380] sm:$0xf]  ;;  %v603_v20 = vadd.f32 %v3069_v58, %v564_v33  ;;  %v2262_v58 = vld [vmem:[%s3563_s1 + $0x194] sm:$0xf] }
 0x142   :  { %v2063_v15 = vor.u32 %v2325_v16, %v2062_v29  ;;  %v1827_v23 = vor.u32 %v2264_v13, %v1824_v34  ;;  %v2254_v33 = vld [vmem:[%s3563_s1 + $0x154] sm:$0xf]  ;;  %v2096_v29 = vld [vmem:[%s3563_s1 + $0x3c8] sm:$0xf0] }
 0x143   :  { %v627_v26 = vmax.f32 %v598_v21, %v613_v10  ;;  %v3179_v31 = vpack.c.bf16 %v648_v22, %v647_v18  ;;  %v541_v21 = vpop.f32.mrf.mxu3  ;;  %v2054_v18 = vld [vmem:[%s3563_s1 + $0x370] sm:$0xf]  ;;  %v2310_v34 = vld [vmem:[%s3563_s1 + $0x314] sm:$0xf] }
 0x145   :  { %v636_v36 = vmax.f32 %v626_v17, %v627_v26  ;;  %1146 = vmatmul.bf16.vlgmr.msrb.gmra.mxu1 %v3179_v31  ;;  %v2323_v26 = vld [vmem:[%s3563_s1 + $0x374] sm:$0xf0] }
 0x146   :  { %1194 = vmatpush.bf16.msrb.mxu1 %v2095_v25 }
 0x147   :  { %v643_v41 = vadd.f32 %v3165_v19, %v636_v36  ;;  %v2055_v36 = vor.u32 %v2323_v26, %v2054_v18  ;;  %v2080_v18 = vld [vmem:[%s3563_s1 + $0x3a8] sm:$0xf0]  ;;  %v2306_v26 = vld [vmem:[%s3563_s1 + $0x2f4] sm:$0xf] }
 0x148   :  { %v614_v17 = vpop.f32.mrf.mxu0  ;;  %v578_v62 = vpop.f32.mrf.mxu2 }
 0x149   :  { %v615_v47 = vadd.f32 %v614_v17, %v576_v46  ;;  %v649_v48 = vmax.f32 %v643_v41, 0.0  ;;  %v579_v50 = vadd.f32 %v578_v62, %v539_v40  ;;  %v2038_v40 = vld [vmem:[%s3563_s1 + $0x350] sm:$0xf] }
 0x14a   :  { %1195 = vmatpush.bf16.msrb.mxu1 %v2087_v39  ;;  %v1819_v39 = vor.u32 %v2262_v58, %v1816_v35  ;;  %v1992_v58 = vld [vmem:[%s3563_s1 + $0x2f8] sm:$0xf0]  ;;  %v2326_v35 = vld [vmem:[%s3563_s1 + $0x394] sm:$0xf] }
 0x14b   :  { %v629_v3 = vmax.f32 %v600_v28, %v615_v47  ;;  %v654_v6 = vpack.c.bf16 %v649_v48, %v648_v22  ;;  %v1800_v28 = vld [vmem:[%s3563_s1 + $0x178] sm:$0xf0]  ;;  %v2316_v47 = vld [vmem:[%s3563_s1 + $0x344] sm:$0xf] }
 0x14c   :  { %v1803_v42 = vor.u32 %v2258_v32, %v1800_v28 }
 0x14d   :  { %v637_v8 = vmax.f32 %v628_v60, %v629_v3  ;;  %1160 = vmatmul.bf16.vlgmr.msrb.gmra.mxu3 %v654_v6  ;;  %1230 = vmatmul.bf16.vlgmr.msra.gmra.mxu2 %v654_v6  ;;  %v2256_v6 = vld [vmem:[%s3563_s1 + $0x164] sm:$0xf] }
 0x14e   :  { %1196 = vmatpush.bf16.msrb.mxu1 %v2079_v51  ;;  %1208 = vmatpush.bf16.msrb.mxu3 %v1843_v55  ;;  %v2039_v55 = vor.u32 %v2319_v44, %v2038_v40  ;;  %v2040_v44 = vld [vmem:[%s3563_s1 + $0x358] sm:$0xf0] }
 0x14f   :  { %v644_v53 = vadd.f32 %v3165_v19, %v637_v8  ;;  %v1784_v8 = vld [vmem:[%s3563_s1 + $0x158] sm:$0xf0] }
 0x150   :  { %v617_v59 = vpop.f32.mrf.mxu0  ;;  %v580_v10 = vpop.f32.mrf.mxu2 }
 0x151   :  { %v650_v56 = vmax.f32 %v644_v53, 0.0  ;;  %v618_v14 = vadd.f32 %v617_v59, %v579_v50  ;;  %v581_v38 = vadd.f32 %v580_v10, %v541_v21  ;;  %v2312_v50 = vld [vmem:[%s3563_s1 + $0x324] sm:$0xf]  ;;  %v1787_v53 = vor.u32 %v2254_v33, %v1784_v8  ;;  %v2008_v59 = vld [vmem:[%s3563_s1 + $0x318] sm:$0xf0] }
 0x152   :  { %1197 = vmatpush.bf16.msrb.mxu1 %v2071_v12  ;;  %1209 = vmatpush.bf16.msrb.mxu3 %v1835_v52  ;;  %v2016_v12 = vld [vmem:[%s3563_s1 + $0x328] sm:$0xf0]  ;;  %v2332_v52 = vld [vmem:[%s3563_s1 + $0x3c4] sm:$0xf]  ;;  %v2338_v33 = vld [vmem:[%s3563_s1 + $0x414] sm:$0xf0] }
 0x153   :  { %v631_v22 = vmax.f32 %v603_v20, %v618_v14  ;;  %v655_v25 = vpack.c.bf16 %v650_v56, %v649_v48  ;;  %v2032_v48 = vld [vmem:[%s3563_s1 + $0x348] sm:$0xf0]  ;;  %v2019_v16 = vor.u32 %v2312_v50, %v2016_v12  ;;  %v2099_v13 = vor.u32 %v2332_v52, %v2096_v29  ;;  %v2330_v20 = vld [vmem:[%s3563_s1 + $0x3b4] sm:$0xf]  ;;  %v2328_v10 = vld [vmem:[%s3563_s1 + $0x3a4] sm:$0xf] }
 0x154   :  { %v2035_v3 = vor.u32 %v2316_v47, %v2032_v48  ;;  %v2011_v14 = vor.u32 %v2310_v34, %v2008_v59  ;;  %v2000_v21 = vld [vmem:[%s3563_s1 + $0x308] sm:$0xf0]  ;;  %v2114_v50 = vld [vmem:[%s3563_s1 + $0x400] sm:$0xf]  ;;  %v2337_v12 = vld [vmem:[%s3563_s1 + $0x404] sm:$0xf0] }
 0x155   :  { %v638_v37 = vmax.f32 %v630_v4, %v631_v22  ;;  %1174 = vmatmul.bf16.vlgmr.msra.gmra.mxu1 %v655_v25  ;;  %1244 = vmatmul.bf16.vlgmr.msra.gmra.mxu0 %v655_v25  ;;  %v1808_v4 = vld [vmem:[%s3563_s1 + $0x188] sm:$0xf0]  ;;  %v2083_v25 = vor.u32 %v2328_v10, %v2080_v18  ;;  %v2115_v52 = vor.u32 %v2337_v12, %v2114_v50  ;;  %v2106_v59 = vld [vmem:[%s3563_s1 + $0x3e0] sm:$0xf] }
 0x156   :  { %1198 = vmatpush.bf16.msrb.mxu1 %v2063_v15  ;;  %1210 = vmatpush.bf16.msrb.mxu3 %v1827_v23  ;;  %v1811_v54 = vor.u32 %v2260_v1, %v1808_v4  ;;  %v2308_v23 = vld [vmem:[%s3563_s1 + $0x304] sm:$0xf]  ;;  %v2302_v1 = vld [vmem:[%s3563_s1 + $0x2d4] sm:$0xf]  ;;  %v1976_v4 = vld [vmem:[%s3563_s1 + $0x2d8] sm:$0xf0] }
 0x157   :  { %v645_v46 = vadd.f32 %v3165_v19, %v638_v37  ;;  %v2003_v22 = vor.u32 %v2308_v23, %v2000_v21  ;;  %v1995_v37 = vor.u32 %v2306_v26, %v1992_v58  ;;  %v2334_v23 = vld [vmem:[%s3563_s1 + $0x3d4] sm:$0xf0]  ;;  %v2162_v18 = vld [vmem:[%s3563_s1 + $0x4c0] sm:$0xf] }
 0x158   :  { %v619_v41 = vpop.f32.mrf.mxu0 }
 0x159   :  { %v651_v61 = vmax.f32 %v645_v46, 0.0  ;;  %v620_v0 = vadd.f32 %v619_v41, %v581_v38  ;;  %v2322_v41 = vld [vmem:[%s3563_s1 + $0x374] sm:$0xf] }
 0x15a   :  { %1199 = vmatpush.bf16.msrb.mxu1 %v2055_v36  ;;  %1211 = vmatpush.bf16.msrb.mxu3 %v1819_v39  ;;  %v2304_v36 = vld [vmem:[%s3563_s1 + $0x2e4] sm:$0xf]  ;;  %v1984_v39 = vld [vmem:[%s3563_s1 + $0x2e8] sm:$0xf0] }
 0x15b   :  { %v633_v17 = vmax.f32 %v605_v63, %v620_v0  ;;  %v3273_v62 = vpack.c.bf16 %v651_v61, %v650_v56  ;;  %v2088_v56 = vld [vmem:[%s3563_s1 + $0x3b8] sm:$0xf0]  ;;  %v1987_v46 = vor.u32 %v2304_v36, %v1984_v39  ;;  %v2347_v36 = vld [vmem:[%s3563_s1 + $0x4a4] sm:$0xf0] }
 0x15c   :  { %v2091_v15 = vor.u32 %v2330_v20, %v2088_v56  ;;  %v2056_v63 = vld [vmem:[%s3563_s1 + $0x378] sm:$0xf0]  ;;  %v2335_v20 = vld [vmem:[%s3563_s1 + $0x3e4] sm:$0xf0] }
 0x15d   :  { %v639_v51 = vmax.f32 %v632_v27, %v633_v17  ;;  %1188 = vmatmul.bf16.vlgmr.msra.gmra.mxu3 %v3273_v62  ;;  %v2059_v0 = vor.u32 %v2322_v41, %v2056_v63  ;;  %v2318_v17 = vld [vmem:[%s3563_s1 + $0x354] sm:$0xf]  ;;  %v2107_v56 = vor.u32 %v2335_v20, %v2106_v59  ;;  %v2134_v59 = vld [vmem:[%s3563_s1 + $0x450] sm:$0xf]  ;;  %v2342_v20 = vld [vmem:[%s3563_s1 + $0x454] sm:$0xf0] }
 0x15e   :  { %1200 = vmatpush.bf16.msrb.mxu1 %v2047_v2  ;;  %1212 = vmatpush.bf16.msrb.mxu3 %v1811_v54  ;;  %v2320_v2 = vld [vmem:[%s3563_s1 + $0x364] sm:$0xf]  ;;  %v2048_v54 = vld [vmem:[%s3563_s1 + $0x368] sm:$0xf0]  ;;  %v2043_v32 = vor.u32 %v2318_v17, %v2040_v44  ;;  %v2345_v17 = vld [vmem:[%s3563_s1 + $0x484] sm:$0xf0] }
 0x15f   :  { %v646_v60 = vadd.f32 %v3165_v19, %v639_v51  ;;  %v1795_v19 = vor.u32 %v2256_v6, %v1792_v30  ;;  %v2051_v40 = vor.u32 %v2320_v2, %v2048_v54  ;;  %v2340_v6 = vld [vmem:[%s3563_s1 + $0x434] sm:$0xf0] }
 0x161   :  { %v652_v27 = vmax.f32 %v646_v60, 0.0 }
 0x162   :  { %1201 = vmatpush.bf16.msrb.mxu1 %v2039_v55  ;;  %1213 = vmatpush.bf16.msrb.mxu3 %v1803_v42  ;;  %v2130_v55 = vld [vmem:[%s3563_s1 + $0x440] sm:$0xf]  ;;  %v2341_v42 = vld [vmem:[%s3563_s1 + $0x444] sm:$0xf0] }
 0x163   :  { %v3307_v57 = vpack.c.bf16 %v652_v27, %v651_v61  ;;  %v1979_v61 = vor.u32 %v2302_v1, %v1976_v4  ;;  %v2339_v27 = vld [vmem:[%s3563_s1 + $0x424] sm:$0xf0]  ;;  %v2346_v1 = vld [vmem:[%s3563_s1 + $0x494] sm:$0xf0] }
 0x165   :  { %1202 = vmatmul.bf16.vlgmr.msrb.gmra.mxu1 %v3307_v57 }
 0x166   :  { %1250 = vmatpush.bf16.msra.mxu1 %v2035_v3  ;;  %1214 = vmatpush.bf16.msrb.mxu3 %v1795_v19  ;;  %v2126_v3 = vld [vmem:[%s3563_s1 + $0x430] sm:$0xf]  ;;  %v2123_v19 = vor.u32 %v2339_v27, %v2122_v24  ;;  %v14_v24 = vunpack.c.h.bf16 %v3150_v11 }
 0x167   :  { %v2127_v30 = vor.u32 %v2340_v6, %v2126_v3  ;;  %v2344_v3 = vld [vmem:[%s3563_s1 + $0x474] sm:$0xf0] }
 0x168   :  { %v1281_v50 = vperm.slane %v14_v24, 0 }
 0x16a   :  { %1251 = vmatpush.bf16.msra.mxu1 %v2027_v7  ;;  %1215 = vmatpush.bf16.msrb.mxu3 %v1787_v53  ;;  %v2118_v7 = vld [vmem:[%s3563_s1 + $0x410] sm:$0xf] }
 0x16b   :  { %v2119_v8 = vor.u32 %v2338_v33, %v2118_v7  ;;  %v2110_v53 = vld [vmem:[%s3563_s1 + $0x3f0] sm:$0xf] }
 0x16d   :  { %1216 = vmatmul.bf16.vlgmr.msrb.gmra.mxu3 %v3179_v31  ;;  %v2072_v31 = vld [vmem:[%s3563_s1 + $0x398] sm:$0xf0] }
 0x16e   :  { %1252 = vmatpush.bf16.msra.mxu1 %v2019_v16  ;;  %1264 = vmatpush.bf16.msra.mxu3 %v2099_v13  ;;  %v2075_v38 = vor.u32 %v2326_v35, %v2072_v31  ;;  %v2336_v16 = vld [vmem:[%s3563_s1 + $0x3f4] sm:$0xf0] }
 0x16f   :  { %v2111_v34 = vor.u32 %v2336_v16, %v2110_v53  ;;  %v2348_v35 = vld [vmem:[%s3563_s1 + $0x4b4] sm:$0xf0]  ;;  %v2138_v16 = vld [vmem:[%s3563_s1 + $0x460] sm:$0xf] }
 0x172   :  { %1253 = vmatpush.bf16.msra.mxu1 %v2011_v14  ;;  %1265 = vmatpush.bf16.msra.mxu3 %v2091_v15  ;;  %v2102_v15 = vld [vmem:[%s3563_s1 + $0x3d0] sm:$0xf] }
 0x173   :  { %v2103_v21 = vor.u32 %v2334_v23, %v2102_v15  ;;  %v2357_v15 = vld [vmem:[%s3563_s1 + $0x4c8] sm:$0xf0]  ;;  %v2190_v23 = vld [vmem:[%s3563_s1 + $0x4b4] sm:$0xf] }
 0x176   :  { %1254 = vmatpush.bf16.msra.mxu1 %v2003_v22  ;;  %1266 = vmatpush.bf16.msra.mxu3 %v2083_v25  ;;  %v2349_v22 = vld [vmem:[%s3563_s1 + $0x4c4] sm:$0xf0]  ;;  %v2158_v25 = vld [vmem:[%s3563_s1 + $0x4b0] sm:$0xf] }
 0x177   :  { %v2163_v58 = vor.u32 %v2349_v22, %v2162_v18  ;;  %v2186_v22 = vld [vmem:[%s3563_s1 + $0x4a4] sm:$0xf] }
 0x179   :  { %1429 = vmatpush.bf16.msrb.mxu0 %v2163_v58  ;;  %v2182_v58 = vld [vmem:[%s3563_s1 + $0x494] sm:$0xf] }
 0x17a   :  { %1255 = vmatpush.bf16.msra.mxu1 %v1995_v37  ;;  %1267 = vmatpush.bf16.msra.mxu3 %v2075_v38  ;;  %v2159_v37 = vor.u32 %v2348_v35, %v2158_v25  ;;  %v2154_v38 = vld [vmem:[%s3563_s1 + $0x4a0] sm:$0xf]  ;;  %v2355_v25 = vld [vmem:[%s3563_s1 + $0x4a8] sm:$0xf0]  ;;  %v2354_v35 = vld [vmem:[%s3563_s1 + $0x498] sm:$0xf0] }
 0x17b   :  { %v2155_v45 = vor.u32 %v2347_v36, %v2154_v38  ;;  %v2353_v38 = vld [vmem:[%s3563_s1 + $0x488] sm:$0xf0] }
 0x17d   :  { %1430 = vmatpush.bf16.msrb.mxu0 %v2159_v37  ;;  %v2178_v37 = vld [vmem:[%s3563_s1 + $0x484] sm:$0xf] }
 0x17e   :  { %1256 = vmatpush.bf16.msra.mxu1 %v1987_v46  ;;  %1268 = vmatpush.bf16.msra.mxu3 %v2067_v5  ;;  %v2150_v5 = vld [vmem:[%s3563_s1 + $0x490] sm:$0xf]  ;;  %v2179_v36 = vor.u32 %v2353_v38, %v2178_v37 }
 0x181   :  { %1431 = vmatpush.bf16.msrb.mxu0 %v2155_v45 }
 0x182   :  { %1257 = vmatpush.bf16.msra.mxu1 %v1979_v61  ;;  %1269 = vmatpush.bf16.msra.mxu3 %v2059_v0  ;;  %v2151_v61 = vor.u32 %v2346_v1, %v2150_v5  ;;  %v2351_v5 = vld [vmem:[%s3563_s1 + $0x468] sm:$0xf0]  ;;  %v1301_v1 = vperm.slane %v13_v49, 1 }
 0x185   :  { %1258 = vmatmul.bf16.vlgmr.msra.gmra.mxu1 %v3273_v62  ;;  %v2131_v62 = vor.u32 %v2341_v42, %v2130_v55  ;;  %1432 = vmatpush.bf16.msrb.mxu0 %v2151_v61 }
 0x186   :  { %1270 = vmatpush.bf16.msra.mxu3 %v2051_v40  ;;  %v2146_v40 = vld [vmem:[%s3563_s1 + $0x480] sm:$0xf] }
 0x187   :  { %1350 = vmatpush.bf16.msrb.mxu2 %v2131_v62  ;;  %v2142_v62 = vld [vmem:[%s3563_s1 + $0x470] sm:$0xf] }
 0x18a   :  { %1271 = vmatpush.bf16.msra.mxu3 %v2043_v32 }
 0x18b   :  { %1351 = vmatpush.bf16.msrb.mxu2 %v2127_v30 }
 0x18d   :  { %1272 = vmatmul.bf16.vlgmr.msra.gmra.mxu3 %v3307_v57 }
 0x18f   :  { %1352 = vmatpush.bf16.msrb.mxu2 %v2123_v19  ;;  %v2143_v19 = vor.u32 %v2344_v3, %v2142_v62 }
 0x193   :  { %1353 = vmatpush.bf16.msrb.mxu2 %v2119_v8 }
 0x197   :  { %1354 = vmatpush.bf16.msrb.mxu2 %v2115_v52 }
 0x19b   :  { %1355 = vmatpush.bf16.msrb.mxu2 %v2111_v34 }
 0x19f   :  { %1356 = vmatpush.bf16.msrb.mxu2 %v2107_v56  ;;  %v2135_v56 = vor.u32 %v2342_v20, %v2134_v59 }
 0x1a3   :  { %1357 = vmatpush.bf16.msrb.mxu2 %v2103_v21 }
 0x1c2   :  { %v1147_v28 = vpop.f32.mrf.mxu1 }
 0x1ca   :  { %v1149_v48 = vpop.f32.mrf.mxu1 }
 0x1d0   :  { %v1161_v47 = vpop.f32.mrf.mxu3  ;;  %v1231_v26 = vpop.f32.mrf.mxu2 }
 0x1d1   :  { %v1162_v4 = vadd.f32 %v1161_v47, %v1147_v28  ;;  %v2147_v47 = vor.u32 %v2345_v17, %v2146_v40  ;;  %v2350_v40 = vld [vmem:[%s3563_s1 + $0x458] sm:$0xf0] }
 0x1d2   :  { %v3409_v60 = vpop.f32.mrf.mxu1  ;;  %v1245_v39 = vpop.f32.mrf.mxu0 }
 0x1d3   :  { %v1176_v44 = vadd.f32 %v3409_v60, %v1162_v4  ;;  %1433 = vmatpush.bf16.msrb.mxu0 %v2147_v47 }
 0x1d7   :  { %1434 = vmatpush.bf16.msrb.mxu0 %v2143_v19 }
 0x1d8   :  { %v1163_v51 = vpop.f32.mrf.mxu3  ;;  %v1233_v41 = vpop.f32.mrf.mxu2 }
 0x1d9   :  { %v1164_v46 = vadd.f32 %v1163_v51, %v1149_v48 }
 0x1da   :  { %v1177_v57 = vpop.f32.mrf.mxu1  ;;  %v1247_v48 = vpop.f32.mrf.mxu0 }
 0x1db   :  { %v1178_v0 = vadd.f32 %v1177_v57, %v1164_v46  ;;  %v2170_v46 = vld [vmem:[%s3563_s1 + $0x464] sm:$0xf] }
 0x1dc   :  { %v2171_v4 = vor.u32 %v2351_v5, %v2170_v46 }
 0x1e0   :  { %v3417_v9 = vpop.f32.mrf.mxu3 }
 0x1e1   :  { %v1190_v51 = vadd.f32 %v3417_v9, %v1176_v44 }
 0x1e2   :  { %v1203_v13 = vpop.f32.mrf.mxu1 }
 0x1e3   :  { %v1204_v57 = vadd.f32 %v1203_v13, %v1190_v51  ;;  %v2343_v13 = vld [vmem:[%s3563_s1 + $0x464] sm:$0xf0] }
 0x1e4   :  { %v2139_v34 = vor.u32 %v2343_v13, %v2138_v16 }
 0x1e6   :  { %1435 = vmatpush.bf16.msrb.mxu0 %v2139_v34 }
 0x1e8   :  { %v1191_v29 = vpop.f32.mrf.mxu3 }
 0x1e9   :  { %v1192_v32 = vadd.f32 %v1191_v29, %v1178_v0 }
 0x1ea   :  { %v1205_v10 = vpop.f32.mrf.mxu1  ;;  %1436 = vmatpush.bf16.msrb.mxu0 %v2135_v56 }
 0x1eb   :  { %v1206_v6 = vadd.f32 %v1205_v10, %v1192_v32  ;;  %v2356_v10 = vld [vmem:[%s3563_s1 + $0x4b8] sm:$0xf0] }
 0x1ec   :  { %v2191_v18 = vor.u32 %v2356_v10, %v2190_v23 }
 0x1ed   :  { %v1278_v33 = vmax.f32 %v1204_v57, %v1206_v6 }
 0x1f0   :  { %v1217_v14 = vpop.f32.mrf.mxu3 }
 0x1f1   :  { %v1232_v2 = vadd.f32 %v1231_v26, %v1217_v14  ;;  %v2194_v14 = vld [vmem:[%s3563_s1 + $0x4c4] sm:$0xf]  ;;  %v2187_v26 = vor.u32 %v2355_v25, %v2186_v22 }
 0x1f2   :  { %v2195_v21 = vor.u32 %v2357_v15, %v2194_v14 }
 0x1f3   :  { %v1246_v55 = vadd.f32 %v1245_v39, %v1232_v2  ;;  %v2174_v39 = vld [vmem:[%s3563_s1 + $0x474] sm:$0xf] }
 0x1f4   :  { %1508 = vmatpush.bf16.msrb.mxu1 %v2195_v21 }
 0x1f8   :  { %v1219_v31 = vpop.f32.mrf.mxu3  ;;  %1509 = vmatpush.bf16.msrb.mxu1 %v2191_v18 }
 0x1f9   :  { %v1234_v54 = vadd.f32 %v1233_v41, %v1219_v31  ;;  %v2183_v31 = vor.u32 %v2354_v35, %v2182_v58 }
 0x1fb   :  { %v1248_v42 = vadd.f32 %v1247_v48, %v1234_v54  ;;  %v2166_v54 = vld [vmem:[%s3563_s1 + $0x454] sm:$0xf]  ;;  %v1459_v48 = vperm.slane %v14_v24, 1 }
 0x1fc   :  { %1510 = vmatpush.bf16.msrb.mxu1 %v2187_v26  ;;  %v2167_v17 = vor.u32 %v2350_v40, %v2166_v54 }
 0x200   :  { %1511 = vmatpush.bf16.msrb.mxu1 %v2183_v31 }
 0x202   :  { %v1259_v43 = vpop.f32.mrf.mxu1 }
 0x203   :  { %v1260_v30 = vadd.f32 %v1259_v43, %v1246_v55  ;;  %v2352_v43 = vld [vmem:[%s3563_s1 + $0x478] sm:$0xf0] }
 0x204   :  { %1512 = vmatpush.bf16.msrb.mxu1 %v2179_v36  ;;  %v2175_v45 = vor.u32 %v2352_v43, %v2174_v39 }
 0x208   :  { %1513 = vmatpush.bf16.msrb.mxu1 %v2175_v45 }
 0x20a   :  { %v1261_v28 = vpop.f32.mrf.mxu1 }
 0x20b   :  { %v1262_v60 = vadd.f32 %v1261_v28, %v1248_v42 }
 0x20c   :  { %1514 = vmatpush.bf16.msrb.mxu1 %v2171_v4 }
 0x210   :  { %v1273_v63 = vpop.f32.mrf.mxu3  ;;  %1515 = vmatpush.bf16.msrb.mxu1 %v2167_v17 }
 0x211   :  { %v1274_v9 = vadd.f32 %v1273_v63, %v1260_v30 }
 0x218   :  { %v1275_v27 = vpop.f32.mrf.mxu3 }
 0x219   :  { %v1276_v7 = vadd.f32 %v1275_v27, %v1262_v60 }
 0x21b   :  { %v1279_v8 = vmax.f32 %v1274_v9, %v1276_v7 }
 0x21d   :  { %v1280_v12 = vmax.f32 %v1278_v33, %v1279_v8 }
 0x21f   :  { %v1282_v52 = vadd.f32 %v1281_v50, %v1280_v12 }
 0x221   :  { %v1283_v29 = vmax.f32 %v1282_v52, 0.0 }
 0x223   :  { %v1284_v53 = vpack.c.bf16 %v1283_v29, %v1283_v29 }
 0x225   :  { %1358 = vmatmul.bf16.vlgmr.msrb.gmra.mxu2 %v1284_v53 }
 0x2a8   :  { %v1359_v41 = vpop.f32.mrf.mxu2 }
 0x2a9   :  { %v1360_v63 = vadd.f32 %v1359_v41, %v1301_v1 }
 0x2ab   :  { %v1363_v61 = vmax.f32 %v1360_v63, 0.0 }
 0x2ad   :  { %v1364_v0 = vpack.c.bf16 %v1363_v61, %v1363_v61 }
 0x2af   :  { %1437 = vmatmul.bf16.vlgmr.msrb.gmra.mxu0 %v1364_v0 }
 0x2b0   :  { %v1361_v2 = vpop.f32.mrf.mxu2 }
 0x32c   :  { %v1438_v49 = vpop.f32.mrf.mxu0 }
 0x32d   :  { %v1442_v44 = vpack.c.bf16 %v1438_v49, %v1438_v49 }
 0x32f   :  { %1516 = vmatmul.bf16.vlgmr.msrb.gmra.mxu1 %v1442_v44 }
 0x334   :  { %v1440_v32 = vpop.f32.mrf.mxu0 }
 0x3ac   :  { %v1517_v28 = vpop.f32.mrf.mxu1 }
 0x3ad   :  { %v1518_v47 = vadd.f32 %v1517_v28, %v1459_v48 }
 0x3af   :  { %1521 = vmax.xlane.f32.xlu0 %v1518_v47 }
 0x3b4   :  { %v1519_v51 = vpop.f32.mrf.mxu1 }
 0x422   :  { %v1522_v55 = vpop.xlane.xlu0 %1521 }
 0x423   :  { %v1523_v42 = vsub.f32 %v1518_v47, %v1522_v55 }
 0x425   :  { %v1524_v62 = vmul.f32 1.442695, %v1523_v42 }
 0x427   :  { %2358 = vpow2.f32 %v1524_v62 }
 0x42d   :  { %v2359_v3 = vpop.eup %2358 }
 0x42e   :  { %1526 = vadd.xlane.f32.xlu0 %v2359_v3 }
 0x4a1   :  { %v1527_v6 = vpop.xlane.xlu0 %1526 }
 0x4a2   :  { %2360 = vlog2.f32 %v1527_v6 }
 0x4a8   :  { %v2361_v30 = vpop.eup %2360 }
 0x4a9   :  { %v1529_v60 = vmul.f32 0.6931472, %v2361_v30 }
 0x4ab   :  { %v1530_v27 = vsub.f32 %v1523_v42, %v1529_v60 }
 0x4ad   :  { %1531 = vst [vmem:[%s3565_s2] sm:$0xff] %v1530_v27 }

</bundles_post_ra>
